<compile_context>
chip_gen: v7x
topology: tpu7x:2x2x1
jax: 0.10.0
libtpu: 0.0.40
codegen_flags: <defaults>
</compile_context>

<pallas_src>
import functools

import jax
import jax.numpy as jnp
import numpy as np
from jax.experimental import pallas as pl
from jax.experimental.pallas import tpu as pltpu

IN_FEATURES = 784          # 28 * 28  (native, unpadded K)
LP = 256                   # padded latent width (2 * 128 lanes)


def _round_up(n, m):
    return -(-n // m) * m


def _const_spec(shape, single_buffer):
    """BlockSpec for a grid-invariant operand (weights / biases / eps)."""
    index_map = lambda i: (0,) * len(shape)
    if single_buffer and hasattr(pl, "Buffered"):
        try:
            return pl.BlockSpec(shape, index_map, pipeline_mode=pl.Buffered(1))
        except TypeError:           # jax build without the pipeline_mode kwarg
            pass
    return pl.BlockSpec(shape, index_map)


def _tile_policy():
    """(batch-tile cap, prefer >=2 grid steps) per TPU generation."""
    try:
        kind = jax.devices()[0].device_kind.lower()
    except Exception:
        kind = ""
    if "v5 lite" in kind or "v5e" in kind:
        return 512, False          # v5e: small default scoped VMEM, 1 TC
    if "v7" in kind:
        return 1024, True          # v7x: 64 MiB VMEM/TC, 2 TCs per chip
    return 1024, False             # v6e and default


def encoder_kernel(x_ref, w1_ref, b1_ref, w2_ref, b2_ref,
                   wh_ref, bh_ref, eps_ref, out_ref):
    lp = b1_ref.shape[-1]

    # li1 + ReLU  (bf16 operands, f32 accumulation on the MXU; K = 784 native)
    h1 = jnp.dot(x_ref[...], w1_ref[...], preferred_element_type=jnp.float32)
    h1 = jnp.maximum(h1 + b1_ref[...], 0.0)

    # li2 + ReLU
    h2 = jnp.dot(h1.astype(jnp.bfloat16), w2_ref[...],
                 preferred_element_type=jnp.float32)
    h2 = jnp.maximum(h2 + b2_ref[...], 0.0)

    # fused mu | log_var heads: a single (LP, 2*LP) matmul
    heads = jnp.dot(h2.astype(jnp.bfloat16), wh_ref[...],
                    preferred_element_type=jnp.float32) + bh_ref[...]
    mu = heads[:, :lp]
    log_var = heads[:, lp:]

    # reparameterization trick
    std = jnp.exp(0.5 * log_var)
    z = mu + eps_ref[...] * std

    # single lane-dense output slab: [z | mu | std]  (128-aligned column splits)
    out_ref[:, :lp] = z.astype(out_ref.dtype)
    out_ref[:, lp:2 * lp] = mu.astype(out_ref.dtype)
    out_ref[:, 2 * lp:] = std.astype(out_ref.dtype)


def encoder_forward(x, packed, eps_pad, latent_size,
                    out_dtype=jnp.bfloat16, single_buffer_consts=True):
    """x: (B, 784) or (B, 28, 28). Returns (z, mu, std), each (B, latent_size)."""
    B = x.shape[0]
    x = x.reshape(B, -1)
    F = x.shape[1]
    assert F == IN_FEATURES, f"expected {IN_FEATURES} input features, got {F}"

    # Stream the input in bf16 (no-op if the producer already emits bf16).
    xb = x if x.dtype == jnp.bfloat16 else x.astype(jnp.bfloat16)

    tb_cap, prefer_two_steps = _tile_policy()
    if B <= tb_cap and not (prefer_two_steps and B >= 256):
        # Small/medium batch: one grid step, no batch padding, no wrapper copies.
        tb, Bp, xp = B, B, xb
    else:
        if B <= tb_cap:
            # v7x mid-size batch: split into 2 steps so both TensorCores work.
            tb = _round_up(-(-B // 2), 16)
        else:
            tb = tb_cap
        Bp = _round_up(B, tb)
        # Single fused batch pad (only materialized when actually needed).
        xp = xb if Bp == B else jnp.zeros((Bp, F), xb.dtype).at[:B].set(xb)

    grid = (Bp // tb,)
    wide = 3 * LP

    itemsize = lambda d: np.dtype(d).itemsize
    bytes_accessed = (
        Bp * F * itemsize(xp.dtype)
        + sum(int(np.prod(packed[k].shape)) * itemsize(packed[k].dtype)
              for k in packed)
        + int(eps_pad.size) * itemsize(eps_pad.dtype)
        + Bp * wide * itemsize(out_dtype))
    cost = pl.CostEstimate(
        flops=2 * Bp * (F * LP + LP * LP + LP * 2 * LP),
        transcendentals=Bp * LP,
        bytes_accessed=int(bytes_accessed))

    out = pl.pallas_call(
        encoder_kernel,
        out_shape=jax.ShapeDtypeStruct((Bp, wide), out_dtype),
        grid=grid,
        in_specs=[
            pl.BlockSpec((tb, F), lambda i: (i, 0)),             # x (streamed)
            _const_spec((F, LP), single_buffer_consts),          # w1 (resident)
            _const_spec((1, LP), single_buffer_consts),          # b1
            _const_spec((LP, LP), single_buffer_consts),         # w2
            _const_spec((1, LP), single_buffer_consts),          # b2
            _const_spec((LP, 2 * LP), single_buffer_consts),     # w_mu|w_lv
            _const_spec((1, 2 * LP), single_buffer_consts),      # b_mu|b_lv
            _const_spec((1, LP), single_buffer_consts),          # eps
        ],
        out_specs=pl.BlockSpec((tb, wide), lambda i: (i, 0)),
        compiler_params=pltpu.CompilerParams(
            dimension_semantics=("parallel",),
            vmem_limit_bytes=32 * 1024 * 1024),
        cost_estimate=cost,
    )(xp, packed["w1"], packed["b1"], packed["w2"], packed["b2"],
      packed["w_heads"], packed["b_heads"], eps_pad)

    z = out[:B, :latent_size]
    mu = out[:B, LP:LP + latent_size]
    std = out[:B, 2 * LP:2 * LP + latent_size]
    return z, mu, std


def init_raw_params(key, latent_size=200, in_features=IN_FEATURES):
    """Unpadded f32 parameters; weights stored as (in_features, out_features)."""
    ks = jax.random.split(key, 8)
    s1 = 1.0 / jnp.sqrt(in_features)
    s2 = 1.0 / jnp.sqrt(latent_size)
    u = jax.random.uniform
    return {
        "w1": u(ks[0], (in_features, latent_size), jnp.float32, -s1, s1),
        "b1": u(ks[1], (1, latent_size), jnp.float32, -s1, s1),
        "w2": u(ks[2], (latent_size, latent_size), jnp.float32, -s2, s2),
        "b2": u(ks[3], (1, latent_size), jnp.float32, -s2, s2),
        "w_mu": u(ks[4], (latent_size, latent_size), jnp.float32, -s2, s2),
        "b_mu": u(ks[5], (1, latent_size), jnp.float32, -s2, s2),
        "w_lv": u(ks[6], (latent_size, latent_size), jnp.float32, -s2, s2),
        "b_lv": u(ks[7], (1, latent_size), jnp.float32, -s2, s2),
    }


def pack_params(raw):
    """Pad the latent dim 200 -> 256, fuse the mu/log_var heads, bf16 weights.
    The input-feature dim (784) is kept unpadded."""
    def pad2(a, rows, cols):
        return jnp.zeros((rows, cols), a.dtype).at[:a.shape[0], :a.shape[1]].set(a)

    k_in = raw["w1"].shape[0]                                   # 784, unpadded
    w1 = pad2(raw["w1"], k_in, LP).astype(jnp.bfloat16)
    w2 = pad2(raw["w2"], LP, LP).astype(jnp.bfloat16)
    w_heads = jnp.concatenate(
        [pad2(raw["w_mu"], LP, LP), pad2(raw["w_lv"], LP, LP)],
        axis=1).astype(jnp.bfloat16)
    b1 = pad2(raw["b1"], 1, LP)
    b2 = pad2(raw["b2"], 1, LP)
    b_heads = jnp.concatenate(
        [pad2(raw["b_mu"], 1, LP), pad2(raw["b_lv"], 1, LP)], axis=1)
    return {"w1": w1, "b1": b1, "w2": w2, "b2": b2,
            "w_heads": w_heads, "b_heads": b_heads}


def reference_forward(x, packed, eps_pad, latent_size, out_dtype=jnp.bfloat16):
    """Plain-JAX reference mirroring the kernel's bf16/f32 arithmetic."""
    x = x.reshape(x.shape[0], -1).astype(jnp.bfloat16)
    h1 = jnp.maximum(jnp.dot(x, packed["w1"],
                             preferred_element_type=jnp.float32) + packed["b1"], 0.0)
    h2 = jnp.maximum(jnp.dot(h1.astype(jnp.bfloat16), packed["w2"],
                             preferred_element_type=jnp.float32) + packed["b2"], 0.0)
    heads = jnp.dot(h2.astype(jnp.bfloat16), packed["w_heads"],
                    preferred_element_type=jnp.float32) + packed["b_heads"]
    mu = heads[:, :latent_size]
    log_var = heads[:, LP:LP + latent_size]
    std = jnp.exp(0.5 * log_var)
    z = mu + eps_pad[:, :latent_size] * std
    return (z.astype(out_dtype), mu.astype(out_dtype), std.astype(out_dtype))


if __name__ == "__main__":
    latent_size = 200
    batch = 8

    root = jax.random.PRNGKey(0)
    k_x, k_p, k_eps = jax.random.split(root, 3)

    # Input batch, flattened 28*28 features per sample (forward's reshape).
    x = jax.random.normal(k_x, (batch, 28 * 28), dtype=jnp.float32)

    raw = init_raw_params(k_p, latent_size=latent_size)
    packed = pack_params(raw)

    # eps ~ N(0, I_latent): a single sample broadcast over the batch
    # (matches torch Normal(zeros(L), ones(L)).sample()); zero-padded to LP.
    eps = jax.random.normal(k_eps, (1, latent_size), dtype=jnp.float32)
    eps_pad = jnp.zeros((1, LP), jnp.float32).at[:, :latent_size].set(eps)

    def run(single_buffer_consts):
        fn = jax.jit(functools.partial(
            encoder_forward, latent_size=latent_size,
            single_buffer_consts=single_buffer_consts))
        out = fn(x, packed, eps_pad)
        jax.block_until_ready(out)
        return out

    try:
        z, mu, std = run(True)
    except Exception:
        # pipeline_mode=pl.Buffered(1) unsupported on this jax build: fall back.
        z, mu, std = run(False)

    z_ref, mu_ref, std_ref = reference_forward(x, packed, eps_pad, latent_size)

    assert z.shape == (batch, latent_size)
    assert mu.shape == (batch, latent_size)
    assert std.shape == (batch, latent_size)

    def close(a, b):
        return bool(jnp.allclose(a.astype(jnp.float32), b.astype(jnp.float32),
                                 atol=2e-2, rtol=2e-2))

    assert close(mu, mu_ref)
    assert close(std, std_ref)
    assert close(z, z_ref)

    print("KERNEL_OK")
</pallas_src>

<mosaic_0001>
module attributes {stable_mosaic.version = 11 : i64} {
  func.func @encoder_kernel(%arg0: i32, %arg1: memref<8x784xbf16, #tpu.memory_space<vmem>>, %arg2: memref<784x256xbf16, #tpu.memory_space<vmem>>, %arg3: memref<1x256xf32, #tpu.memory_space<vmem>>, %arg4: memref<256x256xbf16, #tpu.memory_space<vmem>>, %arg5: memref<1x256xf32, #tpu.memory_space<vmem>>, %arg6: memref<256x512xbf16, #tpu.memory_space<vmem>>, %arg7: memref<1x512xf32, #tpu.memory_space<vmem>>, %arg8: memref<1x256xf32, #tpu.memory_space<vmem>>, %arg9: memref<8x768xbf16, #tpu.memory_space<vmem>>) attributes {dimension_semantics = [#tpu.dimension_semantics<parallel>], iteration_bounds = array<i64: 1>, scalar_prefetch = 0 : i64, scratch_operands = 0 : i64, tpu.core_type = #tpu.core_type<tc>, window_params = [{transform_indices = @transform_0, window_bounds = array<i64: 8, 784>}, {pipeline_mode = #tpu.pipeline_mode<synchronous>, transform_indices = @transform_1, window_bounds = array<i64: 784, 256>}, {pipeline_mode = #tpu.pipeline_mode<synchronous>, transform_indices = @transform_2, window_bounds = array<i64: 1, 256>}, {pipeline_mode = #tpu.pipeline_mode<synchronous>, transform_indices = @transform_3, window_bounds = array<i64: 256, 256>}, {pipeline_mode = #tpu.pipeline_mode<synchronous>, transform_indices = @transform_4, window_bounds = array<i64: 1, 256>}, {pipeline_mode = #tpu.pipeline_mode<synchronous>, transform_indices = @transform_5, window_bounds = array<i64: 256, 512>}, {pipeline_mode = #tpu.pipeline_mode<synchronous>, transform_indices = @transform_6, window_bounds = array<i64: 1, 512>}, {pipeline_mode = #tpu.pipeline_mode<synchronous>, transform_indices = @transform_7, window_bounds = array<i64: 1, 256>}, {transform_indices = @transform_8, window_bounds = array<i64: 8, 768>}]} {
    %c0 = arith.constant 0 : index
    %c0_0 = arith.constant 0 : index
    %0 = vector.load %arg1[%c0, %c0_0] : memref<8x784xbf16, #tpu.memory_space<vmem>>, vector<8x784xbf16>
    %c0_1 = arith.constant 0 : index
    %c0_2 = arith.constant 0 : index
    %1 = vector.load %arg2[%c0_1, %c0_2] : memref<784x256xbf16, #tpu.memory_space<vmem>>, vector<784x256xbf16>
    %cst = arith.constant dense<0.000000e+00> : vector<8x256xf32>
    %2 = tpu.matmul %0, %1, %cst {dimension_numbers = #tpu.dot_dimension_numbers<[1], [0], [0], [1], [0, 0, 1, 1], [], []>} : vector<8x784xbf16>, vector<784x256xbf16>, vector<8x256xf32> -> vector<8x256xf32>
    %c0_3 = arith.constant 0 : index
    %c0_4 = arith.constant 0 : index
    %3 = vector.load %arg3[%c0_3, %c0_4] : memref<1x256xf32, #tpu.memory_space<vmem>>, vector<1x256xf32>
    %4 = vector.broadcast %3 : vector<1x256xf32> to vector<8x256xf32>
    %5 = arith.addf %2, %4 : vector<8x256xf32>
    %cst_5 = arith.constant 0.000000e+00 : f32
    %6 = vector.broadcast %cst_5 : f32 to vector<8x256xf32>
    %7 = arith.maximumf %5, %6 : vector<8x256xf32>
    %8 = arith.truncf %7 : vector<8x256xf32> to vector<8x256xbf16>
    %c0_6 = arith.constant 0 : index
    %c0_7 = arith.constant 0 : index
    %9 = vector.load %arg4[%c0_6, %c0_7] : memref<256x256xbf16, #tpu.memory_space<vmem>>, vector<256x256xbf16>
    %cst_8 = arith.constant dense<0.000000e+00> : vector<8x256xf32>
    %10 = tpu.matmul %8, %9, %cst_8 {dimension_numbers = #tpu.dot_dimension_numbers<[1], [0], [0], [1], [0, 0, 1, 1], [], []>} : vector<8x256xbf16>, vector<256x256xbf16>, vector<8x256xf32> -> vector<8x256xf32>
    %c0_9 = arith.constant 0 : index
    %c0_10 = arith.constant 0 : index
    %11 = vector.load %arg5[%c0_9, %c0_10] : memref<1x256xf32, #tpu.memory_space<vmem>>, vector<1x256xf32>
    %12 = vector.broadcast %11 : vector<1x256xf32> to vector<8x256xf32>
    %13 = arith.addf %10, %12 : vector<8x256xf32>
    %cst_11 = arith.constant 0.000000e+00 : f32
    %14 = vector.broadcast %cst_11 : f32 to vector<8x256xf32>
    %15 = arith.maximumf %13, %14 : vector<8x256xf32>
    %16 = arith.truncf %15 : vector<8x256xf32> to vector<8x256xbf16>
    %c0_12 = arith.constant 0 : index
    %c0_13 = arith.constant 0 : index
    %17 = vector.load %arg6[%c0_12, %c0_13] : memref<256x512xbf16, #tpu.memory_space<vmem>>, vector<256x512xbf16>
    %cst_14 = arith.constant dense<0.000000e+00> : vector<8x512xf32>
    %18 = tpu.matmul %16, %17, %cst_14 {dimension_numbers = #tpu.dot_dimension_numbers<[1], [0], [0], [1], [0, 0, 1, 1], [], []>} : vector<8x256xbf16>, vector<256x512xbf16>, vector<8x512xf32> -> vector<8x512xf32>
    %c0_15 = arith.constant 0 : index
    %c0_16 = arith.constant 0 : index
    %19 = vector.load %arg7[%c0_15, %c0_16] : memref<1x512xf32, #tpu.memory_space<vmem>>, vector<1x512xf32>
    %20 = vector.broadcast %19 : vector<1x512xf32> to vector<8x512xf32>
    %21 = arith.addf %18, %20 : vector<8x512xf32>
    %22 = vector.extract_strided_slice %21 {offsets = [0, 0], sizes = [8, 256], strides = [1, 1]} : vector<8x512xf32> to vector<8x256xf32>
    %23 = vector.extract_strided_slice %21 {offsets = [0, 256], sizes = [8, 256], strides = [1, 1]} : vector<8x512xf32> to vector<8x256xf32>
    %cst_17 = arith.constant 5.000000e-01 : f32
    %24 = vector.broadcast %cst_17 : f32 to vector<8x256xf32>
    %25 = arith.mulf %24, %23 : vector<8x256xf32>
    %26 = math.exp %25 : vector<8x256xf32>
    %c0_18 = arith.constant 0 : index
    %c0_19 = arith.constant 0 : index
    %27 = vector.load %arg8[%c0_18, %c0_19] : memref<1x256xf32, #tpu.memory_space<vmem>>, vector<1x256xf32>
    %28 = vector.broadcast %27 : vector<1x256xf32> to vector<8x256xf32>
    %29 = arith.mulf %28, %26 : vector<8x256xf32>
    %30 = arith.addf %22, %29 : vector<8x256xf32>
    %31 = arith.truncf %30 : vector<8x256xf32> to vector<8x256xbf16>
    %c0_20 = arith.constant 0 : index
    %c0_21 = arith.constant 0 : index
    %32 = vector.load %arg9[%c0_20, %c0_21] : memref<8x768xbf16, #tpu.memory_space<vmem>>, vector<8x256xbf16>
    tpu.vector_store %arg9[%c0_20, %c0_21], %31 {strides = array<i32>} : memref<8x768xbf16, #tpu.memory_space<vmem>>, vector<8x256xbf16>,
    %33 = arith.truncf %22 : vector<8x256xf32> to vector<8x256xbf16>
    %c0_22 = arith.constant 0 : index
    %c256 = arith.constant 256 : index
    %34 = vector.load %arg9[%c0_22, %c256] : memref<8x768xbf16, #tpu.memory_space<vmem>>, vector<8x256xbf16>
    tpu.vector_store %arg9[%c0_22, %c256], %33 {strides = array<i32>} : memref<8x768xbf16, #tpu.memory_space<vmem>>, vector<8x256xbf16>,
    %35 = arith.truncf %26 : vector<8x256xf32> to vector<8x256xbf16>
    %c0_23 = arith.constant 0 : index
    %c512 = arith.constant 512 : index
    %36 = vector.load %arg9[%c0_23, %c512] : memref<8x768xbf16, #tpu.memory_space<vmem>>, vector<8x256xbf16>
    tpu.vector_store %arg9[%c0_23, %c512], %35 {strides = array<i32>} : memref<8x768xbf16, #tpu.memory_space<vmem>>, vector<8x256xbf16>,
    return
  }
  func.func @transform_0(%arg0: i32) -> (i32, i32) {
    %c0_i32 = arith.constant 0 : i32
    %c0_i32_0 = arith.constant 0 : i32
    return %arg0, %c0_i32 : i32, i32
  }
  func.func @transform_1(%arg0: i32) -> (i32, i32) {
    %c0_i32 = arith.constant 0 : i32
    %c0_i32_0 = arith.constant 0 : i32
    %c0_i32_1 = arith.constant 0 : i32
    return %c0_i32, %c0_i32_0 : i32, i32
  }
  func.func @transform_2(%arg0: i32) -> (i32, i32) {
    %c0_i32 = arith.constant 0 : i32
    %c0_i32_0 = arith.constant 0 : i32
    %c0_i32_1 = arith.constant 0 : i32
    return %c0_i32, %c0_i32_0 : i32, i32
  }
  func.func @transform_3(%arg0: i32) -> (i32, i32) {
    %c0_i32 = arith.constant 0 : i32
    %c0_i32_0 = arith.constant 0 : i32
    %c0_i32_1 = arith.constant 0 : i32
    return %c0_i32, %c0_i32_0 : i32, i32
  }
  func.func @transform_4(%arg0: i32) -> (i32, i32) {
    %c0_i32 = arith.constant 0 : i32
    %c0_i32_0 = arith.constant 0 : i32
    %c0_i32_1 = arith.constant 0 : i32
    return %c0_i32, %c0_i32_0 : i32, i32
  }
  func.func @transform_5(%arg0: i32) -> (i32, i32) {
    %c0_i32 = arith.constant 0 : i32
    %c0_i32_0 = arith.constant 0 : i32
    %c0_i32_1 = arith.constant 0 : i32
    return %c0_i32, %c0_i32_0 : i32, i32
  }
  func.func @transform_6(%arg0: i32) -> (i32, i32) {
    %c0_i32 = arith.constant 0 : i32
    %c0_i32_0 = arith.constant 0 : i32
    %c0_i32_1 = arith.constant 0 : i32
    return %c0_i32, %c0_i32_0 : i32, i32
  }
  func.func @transform_7(%arg0: i32) -> (i32, i32) {
    %c0_i32 = arith.constant 0 : i32
    %c0_i32_0 = arith.constant 0 : i32
    %c0_i32_1 = arith.constant 0 : i32
    return %c0_i32, %c0_i32_0 : i32, i32
  }
  func.func @transform_8(%arg0: i32) -> (i32, i32) {
    %c0_i32 = arith.constant 0 : i32
    %c0_i32_0 = arith.constant 0 : i32
    return %arg0, %c0_i32 : i32, i32
  }
}

module attributes {stable_mosaic.version = 11 : i64} {
  func.func @encoder_kernel(%arg0: i32, %arg1: memref<8x784xbf16, #tpu.memory_space<vmem>>, %arg2: memref<784x256xbf16, #tpu.memory_space<vmem>>, %arg3: memref<1x256xf32, #tpu.memory_space<vmem>>, %arg4: memref<256x256xbf16, #tpu.memory_space<vmem>>, %arg5: memref<1x256xf32, #tpu.memory_space<vmem>>, %arg6: memref<256x512xbf16, #tpu.memory_space<vmem>>, %arg7: memref<1x512xf32, #tpu.memory_space<vmem>>, %arg8: memref<1x256xf32, #tpu.memory_space<vmem>>, %arg9: memref<8x768xbf16, #tpu.memory_space<vmem>>) attributes {dimension_semantics = [#tpu.dimension_semantics<parallel>], iteration_bounds = array<i64: 1>, scalar_prefetch = 0 : i64, scratch_operands = 0 : i64, tpu.core_type = #tpu.core_type<tc>, window_params = [{transform_indices = @transform_0, window_bounds = array<i64: 8, 784>}, {pipeline_mode = #tpu.pipeline_mode<synchronous>, transform_indices = @transform_1, window_bounds = array<i64: 784, 256>}, {pipeline_mode = #tpu.pipeline_mode<synchronous>, transform_indices = @transform_2, window_bounds = array<i64: 1, 256>}, {pipeline_mode = #tpu.pipeline_mode<synchronous>, transform_indices = @transform_3, window_bounds = array<i64: 256, 256>}, {pipeline_mode = #tpu.pipeline_mode<synchronous>, transform_indices = @transform_4, window_bounds = array<i64: 1, 256>}, {pipeline_mode = #tpu.pipeline_mode<synchronous>, transform_indices = @transform_5, window_bounds = array<i64: 256, 512>}, {pipeline_mode = #tpu.pipeline_mode<synchronous>, transform_indices = @transform_6, window_bounds = array<i64: 1, 512>}, {pipeline_mode = #tpu.pipeline_mode<synchronous>, transform_indices = @transform_7, window_bounds = array<i64: 1, 256>}, {transform_indices = @transform_8, window_bounds = array<i64: 8, 768>}]} {
    %c0 = arith.constant 0 : index
    %c0_0 = arith.constant 0 : index
    %0 = vector.load %arg1[%c0, %c0_0] : memref<8x784xbf16, #tpu.memory_space<vmem>>, vector<8x784xbf16>
    %c0_1 = arith.constant 0 : index
    %c0_2 = arith.constant 0 : index
    %1 = vector.load %arg2[%c0_1, %c0_2] : memref<784x256xbf16, #tpu.memory_space<vmem>>, vector<784x256xbf16>
    %cst = arith.constant dense<0.000000e+00> : vector<8x256xf32>
    %2 = tpu.matmul %0, %1, %cst {dimension_numbers = #tpu.dot_dimension_numbers<[1], [0], [0], [1], [0, 0, 1, 1], [], []>} : vector<8x784xbf16>, vector<784x256xbf16>, vector<8x256xf32> -> vector<8x256xf32>
    %c0_3 = arith.constant 0 : index
    %c0_4 = arith.constant 0 : index
    %3 = vector.load %arg3[%c0_3, %c0_4] : memref<1x256xf32, #tpu.memory_space<vmem>>, vector<1x256xf32>
    %4 = vector.broadcast %3 : vector<1x256xf32> to vector<8x256xf32>
    %5 = arith.addf %2, %4 : vector<8x256xf32>
    %cst_5 = arith.constant 0.000000e+00 : f32
    %6 = vector.broadcast %cst_5 : f32 to vector<8x256xf32>
    %7 = arith.maximumf %5, %6 : vector<8x256xf32>
    %8 = arith.truncf %7 : vector<8x256xf32> to vector<8x256xbf16>
    %c0_6 = arith.constant 0 : index
    %c0_7 = arith.constant 0 : index
    %9 = vector.load %arg4[%c0_6, %c0_7] : memref<256x256xbf16, #tpu.memory_space<vmem>>, vector<256x256xbf16>
    %cst_8 = arith.constant dense<0.000000e+00> : vector<8x256xf32>
    %10 = tpu.matmul %8, %9, %cst_8 {dimension_numbers = #tpu.dot_dimension_numbers<[1], [0], [0], [1], [0, 0, 1, 1], [], []>} : vector<8x256xbf16>, vector<256x256xbf16>, vector<8x256xf32> -> vector<8x256xf32>
    %c0_9 = arith.constant 0 : index
    %c0_10 = arith.constant 0 : index
    %11 = vector.load %arg5[%c0_9, %c0_10] : memref<1x256xf32, #tpu.memory_space<vmem>>, vector<1x256xf32>
    %12 = vector.broadcast %11 : vector<1x256xf32> to vector<8x256xf32>
    %13 = arith.addf %10, %12 : vector<8x256xf32>
    %cst_11 = arith.constant 0.000000e+00 : f32
    %14 = vector.broadcast %cst_11 : f32 to vector<8x256xf32>
    %15 = arith.maximumf %13, %14 : vector<8x256xf32>
    %16 = arith.truncf %15 : vector<8x256xf32> to vector<8x256xbf16>
    %c0_12 = arith.constant 0 : index
    %c0_13 = arith.constant 0 : index
    %17 = vector.load %arg6[%c0_12, %c0_13] : memref<256x512xbf16, #tpu.memory_space<vmem>>, vector<256x512xbf16>
    %cst_14 = arith.constant dense<0.000000e+00> : vector<8x512xf32>
    %18 = tpu.matmul %16, %17, %cst_14 {dimension_numbers = #tpu.dot_dimension_numbers<[1], [0], [0], [1], [0, 0, 1, 1], [], []>} : vector<8x256xbf16>, vector<256x512xbf16>, vector<8x512xf32> -> vector<8x512xf32>
    %c0_15 = arith.constant 0 : index
    %c0_16 = arith.constant 0 : index
    %19 = vector.load %arg7[%c0_15, %c0_16] : memref<1x512xf32, #tpu.memory_space<vmem>>, vector<1x512xf32>
    %20 = vector.broadcast %19 : vector<1x512xf32> to vector<8x512xf32>
    %21 = arith.addf %18, %20 : vector<8x512xf32>
    %22 = vector.extract_strided_slice %21 {offsets = [0, 0], sizes = [8, 256], strides = [1, 1]} : vector<8x512xf32> to vector<8x256xf32>
    %23 = vector.extract_strided_slice %21 {offsets = [0, 256], sizes = [8, 256], strides = [1, 1]} : vector<8x512xf32> to vector<8x256xf32>
    %cst_17 = arith.constant 5.000000e-01 : f32
    %24 = vector.broadcast %cst_17 : f32 to vector<8x256xf32>
    %25 = arith.mulf %24, %23 : vector<8x256xf32>
    %26 = math.exp %25 : vector<8x256xf32>
    %c0_18 = arith.constant 0 : index
    %c0_19 = arith.constant 0 : index
    %27 = vector.load %arg8[%c0_18, %c0_19] : memref<1x256xf32, #tpu.memory_space<vmem>>, vector<1x256xf32>
    %28 = vector.broadcast %27 : vector<1x256xf32> to vector<8x256xf32>
    %29 = arith.mulf %28, %26 : vector<8x256xf32>
    %30 = arith.addf %22, %29 : vector<8x256xf32>
    %31 = arith.truncf %30 : vector<8x256xf32> to vector<8x256xbf16>
    %c0_20 = arith.constant 0 : index
    %c0_21 = arith.constant 0 : index
    %32 = vector.load %arg9[%c0_20, %c0_21] : memref<8x768xbf16, #tpu.memory_space<vmem>>, vector<8x256xbf16>
    tpu.vector_store %arg9[%c0_20, %c0_21], %31 {strides = array<i32>} : memref<8x768xbf16, #tpu.memory_space<vmem>>, vector<8x256xbf16>,
    %33 = arith.truncf %22 : vector<8x256xf32> to vector<8x256xbf16>
    %c0_22 = arith.constant 0 : index
    %c256 = arith.constant 256 : index
    %34 = vector.load %arg9[%c0_22, %c256] : memref<8x768xbf16, #tpu.memory_space<vmem>>, vector<8x256xbf16>
    tpu.vector_store %arg9[%c0_22, %c256], %33 {strides = array<i32>} : memref<8x768xbf16, #tpu.memory_space<vmem>>, vector<8x256xbf16>,
    %35 = arith.truncf %26 : vector<8x256xf32> to vector<8x256xbf16>
    %c0_23 = arith.constant 0 : index
    %c512 = arith.constant 512 : index
    %36 = vector.load %arg9[%c0_23, %c512] : memref<8x768xbf16, #tpu.memory_space<vmem>>, vector<8x256xbf16>
    tpu.vector_store %arg9[%c0_23, %c512], %35 {strides = array<i32>} : memref<8x768xbf16, #tpu.memory_space<vmem>>, vector<8x256xbf16>,
    return
  }
  func.func @transform_0(%arg0: i32) -> (i32, i32) {
    %c0_i32 = arith.constant 0 : i32
    %c0_i32_0 = arith.constant 0 : i32
    return %arg0, %c0_i32 : i32, i32
  }
  func.func @transform_1(%arg0: i32) -> (i32, i32) {
    %c0_i32 = arith.constant 0 : i32
    %c0_i32_0 = arith.constant 0 : i32
    %c0_i32_1 = arith.constant 0 : i32
    return %c0_i32, %c0_i32_0 : i32, i32
  }
  func.func @transform_2(%arg0: i32) -> (i32, i32) {
    %c0_i32 = arith.constant 0 : i32
    %c0_i32_0 = arith.constant 0 : i32
    %c0_i32_1 = arith.constant 0 : i32
    return %c0_i32, %c0_i32_0 : i32, i32
  }
  func.func @transform_3(%arg0: i32) -> (i32, i32) {
    %c0_i32 = arith.constant 0 : i32
    %c0_i32_0 = arith.constant 0 : i32
    %c0_i32_1 = arith.constant 0 : i32
    return %c0_i32, %c0_i32_0 : i32, i32
  }
  func.func @transform_4(%arg0: i32) -> (i32, i32) {
    %c0_i32 = arith.constant 0 : i32
    %c0_i32_0 = arith.constant 0 : i32
    %c0_i32_1 = arith.constant 0 : i32
    return %c0_i32, %c0_i32_0 : i32, i32
  }
  func.func @transform_5(%arg0: i32) -> (i32, i32) {
    %c0_i32 = arith.constant 0 : i32
    %c0_i32_0 = arith.constant 0 : i32
    %c0_i32_1 = arith.constant 0 : i32
    return %c0_i32, %c0_i32_0 : i32, i32
  }
  func.func @transform_6(%arg0: i32) -> (i32, i32) {
    %c0_i32 = arith.constant 0 : i32
    %c0_i32_0 = arith.constant 0 : i32
    %c0_i32_1 = arith.constant 0 : i32
    return %c0_i32, %c0_i32_0 : i32, i32
  }
  func.func @transform_7(%arg0: i32) -> (i32, i32) {
    %c0_i32 = arith.constant 0 : i32
    %c0_i32_0 = arith.constant 0 : i32
    %c0_i32_1 = arith.constant 0 : i32
    return %c0_i32, %c0_i32_0 : i32, i32
  }
  func.func @transform_8(%arg0: i32) -> (i32, i32) {
    %c0_i32 = arith.constant 0 : i32
    %c0_i32_0 = arith.constant 0 : i32
    return %arg0, %c0_i32 : i32, i32
  }
}

</mosaic_0001>

<bundles_post_ra>
// kernel: encoder_forward.1
= control target key start
LH: loop header
LB: loop body
LE: loop exit
PB: predicated region body
PF: predicated region fallthrough
CT: control target
= control target key end

     0   :  { %13 = vsyncpa [#allocation3], 0  ;;  %s2426_s0 = inlined_call_operand.vmem [shape: bf16[8,784], index: 0, kind: input, shape index: {}]   ;;  %s2427_s1 = inlined_call_operand.hbm [shape: bf16[784,256], index: 1, kind: input, shape index: {}]   ;;  %s2428_s2 = inlined_call_operand.vmem [shape: f32[1,256], index: 2, kind: input, shape index: {}]   ;;  %s2429_s3 = inlined_call_operand.hbm [shape: bf16[256,256], index: 3, kind: input, shape index: {}]   ;;  %s2430_s4 = inlined_call_operand.vmem [shape: f32[1,256], index: 4, kind: input, shape index: {}]   ;;  %s2431_s5 = inlined_call_operand.hbm [shape: bf16[256,512], index: 5, kind: input, shape index: {}]   ;;  %s2432_s6 = inlined_call_operand.vmem [shape: f32[1,512], index: 6, kind: input, shape index: {}]   ;;  %s2433_s7 = inlined_call_operand.vmem [shape: f32[1,256], index: 7, kind: input, shape index: {}]   ;;  %s2434_s8 = inlined_call_operand.vmem [shape: bf16[8,768], index: 8, kind: output, shape index: {}]  }
   0x1   :  { %14 = vsyncpa [#allocation5], 0  ;;  %s2263_s27 = smov [#allocation4]   ;;  %s2264_s29 = smov [#allocation2]  }
   0x2   :  { %s36_s28 = sshll.u32 %s2263_s27, 4  ;;  %s22_s30 = sshll.u32 %s2264_s29, 4  ;;  %s37_s28 = int_to_ptr.vmem [resolvable:$true] %s36_s28  ;;  %s2316_s30 = int_to_ptr.vmem [resolvable:$true] %s22_s30 }
   0x3   :  { %s2193_s11 = scalar_lea.hbm %s2429_s3, 4096 }
   0x4   :  { %p2194_p0 = scmp.ne.s32.totalorder %s2429_s3, %s2193_s11  ;;  %p2197_p1 = scmp.lt.u32.totalorder %s2193_s11, %s2429_s3 }
   0x6   :  { %p2199_p2 = pnand %p2197_p1, %p2194_p0 }
   0x8   :  { %2202 = shalt.err (!%p2199_p2)
}
   0x9   :  { %s2203_s16 = scalar_lea.vmem %s37_s28, 4096  ;;  %p2208_p4 = scmp.lt.s32.totalorder %s37_s28, %s37_s28 }
   0xa   :  { %p2204_p3 = scmp.ne.s32.totalorder %s37_s28, %s2203_s16  ;;  %p2209_p5 = scmp.lt.s32.totalorder %s2203_s16, %s2203_s16 }
   0xc   :  { %p2210_p6 = por %p2209_p5, %p2208_p4 }
   0xe   :  { %p2211_p7 = pnand %p2210_p6, %p2204_p3 }
  0x10   :  { %2214 = shalt.err (!%p2211_p7)
}
  0x11   :  { %s2265_s17 = smov 128   ;;  %s2266_s18 = smov 8  }
  0x12   :  { %42 = dma.hbm_to_vmem [thread:$0]  %s2429_s3, 4096, %s37_s28, [#allocation5], %s2265_s17, %s2265_s17, %s2266_s18  }
  0x13   :  { %s2215_s23 = scalar_lea.hbm %s2427_s1, 12544 }
  0x14   :  { %p2216_p8 = scmp.ne.s32.totalorder %s2427_s1, %s2215_s23  ;;  %p2219_p9 = scmp.lt.u32.totalorder %s2215_s23, %s2427_s1 }
  0x16   :  { %p2221_p10 = pnand %p2219_p9, %p2216_p8 }
  0x18   :  { %2224 = shalt.err (!%p2221_p10)
}
  0x19   :  { %s2225_s29 = scalar_lea.vmem %s2316_s30, 12544  ;;  %p2230_p12 = scmp.lt.s32.totalorder %s2316_s30, %s2316_s30 }
  0x1a   :  { %p2226_p11 = scmp.ne.s32.totalorder %s2316_s30, %s2225_s29  ;;  %p2231_p13 = scmp.lt.s32.totalorder %s2225_s29, %s2225_s29 }
  0x1c   :  { %p2232_p0 = por %p2231_p13, %p2230_p12 }
  0x1e   :  { %p2233_p1 = pnand %p2232_p0, %p2226_p11 }
  0x20   :  { %2236 = shalt.err (!%p2233_p1)
}
  0x21   :  { %28 = dma.hbm_to_vmem [thread:$0]  %s2427_s1, 12544, %s2316_s30, [#allocation3], %s2265_s17, %s2265_s17, %s2266_s18  }
  0x22   :  { %s2267_s9 = smov [#allocation6]   ;;  %s2237_s13 = scalar_lea.hbm %s2431_s5, 8192 }
  0x23   :  { %s50_s10 = sshll.u32 %s2267_s9, 4  ;;  %p2238_p2 = scmp.ne.s32.totalorder %s2431_s5, %s2237_s13  ;;  %s51_s10 = int_to_ptr.vmem [resolvable:$true] %s50_s10 }
  0x24   :  { %p2241_p3 = scmp.lt.u32.totalorder %s2237_s13, %s2431_s5 }
  0x26   :  { %p2243_p4 = pnand %p2241_p3, %p2238_p2 }
  0x28   :  { %2246 = shalt.err (!%p2243_p4)
}
  0x29   :  { %s2247_s20 = scalar_lea.vmem %s51_s10, 8192  ;;  %p2252_p6 = scmp.lt.s32.totalorder %s51_s10, %s51_s10 }
  0x2a   :  { %p2248_p5 = scmp.ne.s32.totalorder %s51_s10, %s2247_s20  ;;  %p2253_p7 = scmp.lt.s32.totalorder %s2247_s20, %s2247_s20 }
  0x2c   :  { %p2254_p8 = por %p2253_p7, %p2252_p6 }
  0x2e   :  { %p2255_p9 = pnand %p2254_p8, %p2248_p5 }
  0x30   :  { %2258 = shalt.err (!%p2255_p9)
}
  0x31   :  { %s2268_s1 = smov 256   ;;  %s2269_s30 = smov 16  }
  0x32   :  { %56 = dma.hbm_to_vmem [thread:$0]  %s2431_s5, 8192, %s51_s10, [#allocation5], %s2268_s1, %s2268_s1, %s2269_s30  }
  0x33   :  { %2259 = dma.done.wait [#allocation3], 12544  }
  0x34   :  { %2260 = vsyncadd [#allocation3], 4294954752 }
  0x35   :  { %2261 = dma.done.wait [#allocation5], 12288  }
  0x36   :  { %2262 = vsyncadd [#allocation5], 4294955008  ;;  %v1891_v0 = vld [vmem:[#allocation2 + $0x4] ss:$8 sps:$4 sm:$0xff]   ;;  %v1893_v1 = vld [vmem:[#allocation2] ss:$8 sps:$4 sm:$0xff]  }
  0x37   :  { %703 = vmatprep.subr.bf16.mxu0 %v1891_v0  ;;  %v1894_v2 = vld [vmem:[#allocation2 + $0x14] ss:$8 sps:$4 sm:$0xff]   ;;  %v1896_v3 = vld [vmem:[#allocation2 + $0x10] ss:$8 sps:$4 sm:$0xff]   ;;  %v1897_v4 = vld [vmem:[#allocation2 + $0x24] ss:$8 sps:$4 sm:$0xff]  }
  0x38   :  { %704 = vmatpush1.bf16.msra.mxu0 %v1893_v1  ;;  %v1899_v5 = vld [vmem:[#allocation2 + $0x20] ss:$8 sps:$4 sm:$0xff]   ;;  %v1900_v6 = vld [vmem:[#allocation2 + $0x34] ss:$8 sps:$4 sm:$0xff]   ;;  %v1902_v7 = vld [vmem:[#allocation2 + $0x30] ss:$8 sps:$4 sm:$0xff]  }
  0x39   :  { %705 = vmatprep.subr.bf16.mxu0 %v1894_v2  ;;  %v1903_v8 = vld [vmem:[#allocation2 + $0x44] ss:$8 sps:$4 sm:$0xff]   ;;  %v1905_v9 = vld [vmem:[#allocation2 + $0x40] ss:$8 sps:$4 sm:$0xff]   ;;  %v1906_v10 = vld [vmem:[#allocation2 + $0x54] ss:$8 sps:$4 sm:$0xff]  }
  0x3a   :  { %v1908_v11 = vld [vmem:[#allocation2 + $0x50] ss:$8 sps:$4 sm:$0xff]   ;;  %v1909_v12 = vld [vmem:[#allocation2 + $0x64] ss:$8 sps:$4 sm:$0xff]   ;;  %v1911_v15 = vld [vmem:[#allocation2 + $0x60] ss:$8 sps:$4 sm:$0xff]  }
  0x3b   :  { %v71_v13 = vld [vmem:[%s2426_s0] sm:$0xff]  ;;  %v1912_v16 = vld [vmem:[#allocation2 + $0x74] ss:$8 sps:$4 sm:$0xff]   ;;  %v1914_v17 = vld [vmem:[#allocation2 + $0x70] ss:$8 sps:$4 sm:$0xff]   ;;  %v2270_v41 = vmov 0  }
  0x3c   :  { %706 = vmatpush1.bf16.msra.mxu0 %v1896_v3  ;;  %v1664_v14 = vcombine.high %v71_v13, %v71_v13  ;;  %v1915_v18 = vld [vmem:[#allocation2 + $0x84] ss:$8 sps:$4 sm:$0xff]   ;;  %v1917_v19 = vld [vmem:[#allocation2 + $0x80] ss:$8 sps:$4 sm:$0xff]   ;;  %v1918_v20 = vld [vmem:[#allocation2 + $0x94] ss:$8 sps:$4 sm:$0xff]   ;;  %v1663_v36 = vcombine.low %v71_v13, %v71_v13  ;;  %858 = vmatprep.mubr.bf16.mxu1 %v2270_v41 }
  0x3d   :  { %707 = vmatprep.subr.bf16.mxu0 %v1897_v4  ;;  %v1920_v21 = vld [vmem:[#allocation2 + $0x90] ss:$8 sps:$4 sm:$0xff]   ;;  %v1921_v22 = vld [vmem:[#allocation2 + $0xa4] ss:$8 sps:$4 sm:$0xff]   ;;  %v1923_v23 = vld [vmem:[#allocation2 + $0xa0] ss:$8 sps:$4 sm:$0xff]  }
  0x3e   :  { %735 = vmatprep.mubr.bf16.mxu0 %v1664_v14  ;;  %v1924_v24 = vld [vmem:[#allocation2 + $0xb4] ss:$8 sps:$4 sm:$0xff]   ;;  %v1926_v25 = vld [vmem:[#allocation2 + $0xb0] ss:$8 sps:$4 sm:$0xff]   ;;  %v1927_v26 = vld [vmem:[#allocation2 + $0xc4] ss:$8 sps:$4 sm:$0xff]  }
  0x3f   :  { %v1929_v27 = vld [vmem:[#allocation2 + $0xc0] ss:$8 sps:$4 sm:$0xff]   ;;  %v1930_v28 = vld [vmem:[#allocation2 + $0xd4] ss:$8 sps:$4 sm:$0xff]   ;;  %v1932_v29 = vld [vmem:[#allocation2 + $0xd0] ss:$8 sps:$4 sm:$0xff]  }
  0x40   :  { %708 = vmatpush1.bf16.msra.mxu0 %v1899_v5  ;;  %v1933_v30 = vld [vmem:[#allocation2 + $0xe4] ss:$8 sps:$4 sm:$0xff]   ;;  %v1935_v31 = vld [vmem:[#allocation2 + $0xe0] ss:$8 sps:$4 sm:$0xff]   ;;  %v1936_v32 = vld [vmem:[#allocation2 + $0xf4] ss:$8 sps:$4 sm:$0xff]  }
  0x41   :  { %709 = vmatprep.subr.bf16.mxu0 %v1900_v6  ;;  %v1938_v33 = vld [vmem:[#allocation2 + $0xf0] ss:$8 sps:$4 sm:$0xff]   ;;  %v1943_v34 = vld [vmem:[#allocation2 + $0x104] ss:$8 sps:$4 sm:$0xff]   ;;  %v1941_v37 = vld [vmem:[#allocation2 + $0x100] ss:$8 sps:$4 sm:$0xff]  }
  0x42   :  { %v2365_v35 = vld [vmem:[%s2426_s0 + $0x8] sm:$0xff]  ;;  %v1946_v38 = vld [vmem:[#allocation2 + $0x114] ss:$8 sps:$4 sm:$0xff]   ;;  %v1944_v42 = vld [vmem:[#allocation2 + $0x110] ss:$8 sps:$4 sm:$0xff]   ;;  %vm699_vm0 = vcmask 130048  }
  0x43   :  { %v1666_v39 = vcombine.high %v2365_v35, %v2365_v35  ;;  %v2036_v40 = vld [vmem:[#allocation2 + $0x304] ss:$8 sps:$4 sm:$0xff]   ;;  %v2041_v43 = vld [vmem:[#allocation2 + $0x300] ss:$8 sps:$4 sm:$0xff]   ;;  %v2044_v45 = vld [vmem:[%s2426_s0 + $0x18] ss:$0 sps:$4 sm:$0xff]  }
  0x44   :  { %710 = vmatpush1.bf16.msra.mxu0 %v1902_v7  ;;  %v1949_v44 = vld [vmem:[#allocation2 + $0x124] ss:$8 sps:$4 sm:$0xff]   ;;  %826 = vmatprep.subr.bf16.mxu1 %v2036_v40  ;;  %v2045_v46 = vld [vmem:[#allocation4] ss:$8 sps:$4 sm:$0xff]   ;;  %v2047_v47 = vld [vmem:[#allocation4 + $0x4] ss:$8 sps:$4 sm:$0xff]  }
  0x45   :  { %711 = vmatprep.subr.bf16.mxu0 %v1903_v8  ;;  %827 = vmatpush1.bf16.msra.mxu1 %v2041_v43  ;;  %v2050_v48 = vld [vmem:[#allocation4 + $0x14] ss:$8 sps:$4 sm:$0xff]   ;;  %v1947_v49 = vld [vmem:[#allocation2 + $0x120] ss:$8 sps:$4 sm:$0xff]   ;;  %v1952_v50 = vld [vmem:[#allocation2 + $0x134] ss:$8 sps:$4 sm:$0xff]  }
  0x46   :  { %1075 = vmatprep.subr.bf16.mxu1 %v2047_v47  ;;  %v2048_v51 = vld [vmem:[#allocation4 + $0x10] ss:$8 sps:$4 sm:$0xff]   ;;  %v2053_v52 = vld [vmem:[#allocation4 + $0x24] ss:$8 sps:$4 sm:$0xff]   ;;  %v1950_v53 = vld [vmem:[#allocation2 + $0x130] ss:$8 sps:$4 sm:$0xff]  }
  0x47   :  { %v1955_v54 = vld [vmem:[#allocation2 + $0x144] ss:$8 sps:$4 sm:$0xff]   ;;  %v2051_v55 = vld [vmem:[#allocation4 + $0x20] ss:$8 sps:$4 sm:$0xff]   ;;  %v1953_v57 = vld [vmem:[#allocation2 + $0x140] ss:$8 sps:$4 sm:$0xff]  }
  0x48   :  { %712 = vmatpush1.bf16.msra.mxu0 %v1905_v9  ;;  %1768 = vmatmul.mubr.msk.bf16.vlgmr.msra.gmra.mrb[0].mxu1 %vm699_vm0, %v2044_v45  ;;  %v2056_v56 = vld [vmem:[#allocation4 + $0x34] ss:$8 sps:$4 sm:$0xff]   ;;  %v1958_v58 = vld [vmem:[#allocation2 + $0x154] ss:$8 sps:$4 sm:$0xff]   ;;  %v2054_v59 = vld [vmem:[#allocation4 + $0x30] ss:$8 sps:$4 sm:$0xff]  }
  0x49   :  { %713 = vmatprep.subr.bf16.mxu0 %v1906_v10  ;;  %1076 = vmatpush1.bf16.msra.mxu1 %v2045_v46  ;;  %v2059_v60 = vld [vmem:[#allocation4 + $0x44] ss:$8 sps:$4 sm:$0xff]   ;;  %v1956_v61 = vld [vmem:[#allocation2 + $0x150] ss:$8 sps:$4 sm:$0xff]   ;;  %v1961_v62 = vld [vmem:[#allocation2 + $0x164] ss:$8 sps:$4 sm:$0xff]  }
  0x4a   :  { %1077 = vmatprep.subr.bf16.mxu1 %v2050_v48  ;;  %v2057_v63 = vld [vmem:[#allocation4 + $0x40] ss:$8 sps:$4 sm:$0xff]   ;;  %v2062_v0 = vld [vmem:[#allocation4 + $0x54] ss:$8 sps:$4 sm:$0xff]   ;;  %v1959_v1 = vld [vmem:[#allocation2 + $0x160] ss:$8 sps:$4 sm:$0xff]  }
  0x4b   :  { %v1964_v2 = vld [vmem:[#allocation2 + $0x174] ss:$8 sps:$4 sm:$0xff]   ;;  %v2060_v3 = vld [vmem:[#allocation4 + $0x50] ss:$8 sps:$4 sm:$0xff]   ;;  %v1962_v5 = vld [vmem:[#allocation2 + $0x170] ss:$8 sps:$4 sm:$0xff]  }
  0x4c   :  { %714 = vmatpush1.bf16.msra.mxu0 %v1908_v11  ;;  %v2065_v4 = vld [vmem:[#allocation4 + $0x64] ss:$8 sps:$4 sm:$0xff]   ;;  %v1967_v6 = vld [vmem:[#allocation2 + $0x184] ss:$8 sps:$4 sm:$0xff]   ;;  %v2063_v7 = vld [vmem:[#allocation4 + $0x60] ss:$8 sps:$4 sm:$0xff]  }
  0x4d   :  { %715 = vmatprep.subr.bf16.mxu0 %v1909_v12  ;;  %1078 = vmatpush1.bf16.msra.mxu1 %v2048_v51  ;;  %v2068_v8 = vld [vmem:[#allocation4 + $0x74] ss:$8 sps:$4 sm:$0xff]   ;;  %v1965_v9 = vld [vmem:[#allocation2 + $0x180] ss:$8 sps:$4 sm:$0xff]   ;;  %v1970_v10 = vld [vmem:[#allocation2 + $0x194] ss:$8 sps:$4 sm:$0xff]  }
  0x4e   :  { %1079 = vmatprep.subr.bf16.mxu1 %v2053_v52  ;;  %v2066_v11 = vld [vmem:[#allocation4 + $0x70] ss:$8 sps:$4 sm:$0xff]   ;;  %v2071_v12 = vld [vmem:[#allocation4 + $0x84] ss:$8 sps:$4 sm:$0xff]   ;;  %v1968_v13 = vld [vmem:[#allocation2 + $0x190] ss:$8 sps:$4 sm:$0xff]  }
  0x4f   :  { %v1973_v14 = vld [vmem:[#allocation2 + $0x1a4] ss:$8 sps:$4 sm:$0xff]   ;;  %v1996_v41 = vld [vmem:[#allocation2 + $0x214] ss:$8 sps:$4 sm:$0xff]   ;;  %v2000_v46 = vld [vmem:[#allocation2 + $0x230] ss:$8 sps:$4 sm:$0xff]  }
  0x50   :  { %716 = vmatpush1.bf16.msra.mxu0 %v1911_v15  ;;  %v2069_v15 = vld [vmem:[#allocation4 + $0x80] ss:$8 sps:$4 sm:$0xff]   ;;  %v1999_v43 = vld [vmem:[#allocation2 + $0x224] ss:$8 sps:$4 sm:$0xff]   ;;  %v2002_v45 = vld [vmem:[#allocation2 + $0x234] ss:$8 sps:$4 sm:$0xff]  }
  0x51   :  { %717 = vmatprep.subr.bf16.mxu0 %v1912_v16  ;;  %1080 = vmatpush1.bf16.msra.mxu1 %v2051_v55  ;;  %v2074_v16 = vld [vmem:[#allocation4 + $0x94] ss:$8 sps:$4 sm:$0xff]   ;;  %v2003_v47 = vld [vmem:[#allocation2 + $0x240] ss:$8 sps:$4 sm:$0xff]   ;;  %v2008_v48 = vld [vmem:[#allocation2 + $0x254] ss:$8 sps:$4 sm:$0xff]  }
  0x52   :  { %1081 = vmatprep.subr.bf16.mxu1 %v2056_v56  ;;  %v2009_v51 = vld [vmem:[#allocation2 + $0x260] ss:$8 sps:$4 sm:$0xff]   ;;  %v2014_v52 = vld [vmem:[#allocation2 + $0x274] ss:$8 sps:$4 sm:$0xff]   ;;  %v2012_v55 = vld [vmem:[#allocation2 + $0x270] ss:$8 sps:$4 sm:$0xff]  }
  0x53   :  { %v2017_v56 = vld [vmem:[#allocation2 + $0x284] ss:$8 sps:$4 sm:$0xff]  }
  0x54   :  { %718 = vmatpush1.bf16.msra.mxu0 %v1914_v17  ;;  %v1971_v17 = vld [vmem:[#allocation2 + $0x1a0] ss:$8 sps:$4 sm:$0xff]  }
  0x55   :  { %719 = vmatprep.subr.bf16.mxu0 %v1915_v18  ;;  %1082 = vmatpush1.bf16.msra.mxu1 %v2054_v59  ;;  %v1976_v18 = vld [vmem:[#allocation2 + $0x1b4] ss:$8 sps:$4 sm:$0xff]   ;;  %v2018_v59 = vld [vmem:[#allocation2 + $0x290] ss:$8 sps:$4 sm:$0xff]  }
  0x56   :  { %1083 = vmatprep.subr.bf16.mxu1 %v2059_v60  ;;  %v2023_v60 = vld [vmem:[#allocation2 + $0x2a4] ss:$8 sps:$4 sm:$0xff]  }
  0x58   :  { %720 = vmatpush1.bf16.msra.mxu0 %v1917_v19  ;;  %v2072_v19 = vld [vmem:[#allocation4 + $0x90] ss:$8 sps:$4 sm:$0xff]  }
  0x59   :  { %721 = vmatprep.subr.bf16.mxu0 %v1918_v20  ;;  %1084 = vmatpush1.bf16.msra.mxu1 %v2057_v63  ;;  %v2077_v20 = vld [vmem:[#allocation4 + $0xa4] ss:$8 sps:$4 sm:$0xff]   ;;  %v2024_v63 = vld [vmem:[#allocation2 + $0x2b0] ss:$8 sps:$4 sm:$0xff]  }
  0x5a   :  { %1085 = vmatprep.subr.bf16.mxu1 %v2062_v0  ;;  %v2029_v0 = vld [vmem:[#allocation2 + $0x2c4] ss:$8 sps:$4 sm:$0xff]  }
  0x5c   :  { %722 = vmatpush1.bf16.msra.mxu0 %v1920_v21  ;;  %v1974_v21 = vld [vmem:[#allocation2 + $0x1b0] ss:$8 sps:$4 sm:$0xff]  }
  0x5d   :  { %723 = vmatprep.subr.bf16.mxu0 %v1921_v22  ;;  %1086 = vmatpush1.bf16.msra.mxu1 %v2060_v3  ;;  %v1979_v22 = vld [vmem:[#allocation2 + $0x1c4] ss:$8 sps:$4 sm:$0xff]   ;;  %v2030_v3 = vld [vmem:[#allocation2 + $0x2d0] ss:$8 sps:$4 sm:$0xff]  }
  0x5e   :  { %1087 = vmatprep.subr.bf16.mxu1 %v2065_v4  ;;  %v2035_v4 = vld [vmem:[#allocation2 + $0x2e4] ss:$8 sps:$4 sm:$0xff]  }
  0x60   :  { %724 = vmatpush1.bf16.msra.mxu0 %v1923_v23  ;;  %v2075_v23 = vld [vmem:[#allocation4 + $0xa0] ss:$8 sps:$4 sm:$0xff]  }
  0x61   :  { %725 = vmatprep.subr.bf16.mxu0 %v1924_v24  ;;  %1088 = vmatpush1.bf16.msra.mxu1 %v2063_v7  ;;  %v2080_v24 = vld [vmem:[#allocation4 + $0xb4] ss:$8 sps:$4 sm:$0xff]   ;;  %v2038_v7 = vld [vmem:[#allocation2 + $0x2f0] ss:$8 sps:$4 sm:$0xff]  }
  0x62   :  { %1089 = vmatprep.subr.bf16.mxu1 %v2068_v8 }
  0x64   :  { %726 = vmatpush1.bf16.msra.mxu0 %v1926_v25  ;;  %v1977_v25 = vld [vmem:[#allocation2 + $0x1c0] ss:$8 sps:$4 sm:$0xff]  }
  0x65   :  { %727 = vmatprep.subr.bf16.mxu0 %v1927_v26  ;;  %1090 = vmatpush1.bf16.msra.mxu1 %v2066_v11  ;;  %v1982_v26 = vld [vmem:[#allocation2 + $0x1d4] ss:$8 sps:$4 sm:$0xff]  }
  0x66   :  { %1091 = vmatprep.subr.bf16.mxu1 %v2071_v12  ;;  %v2092_v12 = vld [vmem:[#allocation4 + $0xf4] ss:$8 sps:$4 sm:$0xff]  }
  0x68   :  { %728 = vmatpush1.bf16.msra.mxu0 %v1929_v27  ;;  %v2078_v27 = vld [vmem:[#allocation4 + $0xb0] ss:$8 sps:$4 sm:$0xff]  }
  0x69   :  { %729 = vmatprep.subr.bf16.mxu0 %v1930_v28  ;;  %1092 = vmatpush1.bf16.msra.mxu1 %v2069_v15  ;;  %v2083_v28 = vld [vmem:[#allocation4 + $0xc4] ss:$8 sps:$4 sm:$0xff]  }
  0x6a   :  { %1093 = vmatprep.subr.bf16.mxu1 %v2074_v16 }
  0x6c   :  { %730 = vmatpush1.bf16.msra.mxu0 %v1932_v29  ;;  %v1980_v29 = vld [vmem:[#allocation2 + $0x1d0] ss:$8 sps:$4 sm:$0xff]  }
  0x6d   :  { %731 = vmatprep.subr.bf16.mxu0 %v1933_v30  ;;  %1094 = vmatpush1.bf16.msra.mxu1 %v2072_v19  ;;  %v1985_v30 = vld [vmem:[#allocation2 + $0x1e4] ss:$8 sps:$4 sm:$0xff]  }
  0x6e   :  { %1095 = vmatprep.subr.bf16.mxu1 %v2077_v20 }
  0x70   :  { %732 = vmatpush1.bf16.msra.mxu0 %v1935_v31  ;;  %v2081_v31 = vld [vmem:[#allocation4 + $0xc0] ss:$8 sps:$4 sm:$0xff]  }
  0x71   :  { %733 = vmatprep.subr.bf16.mxu0 %v1936_v32  ;;  %1096 = vmatpush1.bf16.msra.mxu1 %v2075_v23  ;;  %v1983_v32 = vld [vmem:[#allocation2 + $0x1e0] ss:$8 sps:$4 sm:$0xff]  }
  0x72   :  { %1097 = vmatprep.subr.bf16.mxu1 %v2080_v24 }
  0x74   :  { %734 = vmatpush1.bf16.msra.mxu0 %v1938_v33  ;;  %v1988_v33 = vld [vmem:[#allocation2 + $0x1f4] ss:$8 sps:$4 sm:$0xff]  }
  0x75   :  { %744 = vmatprep.subr.bf16.mxu0 %v1943_v34  ;;  %1098 = vmatpush1.bf16.msra.mxu1 %v2078_v27  ;;  %v1986_v34 = vld [vmem:[#allocation2 + $0x1f0] ss:$8 sps:$4 sm:$0xff]  }
  0x76   :  { %1099 = vmatprep.subr.bf16.mxu1 %v2083_v28 }
  0x77   :  { %736 = vmatmul.mubr.bf16.vlgmr.msra.gmra.mrb[0].mxu0 %v1663_v36  ;;  %v1993_v36 = vld [vmem:[#allocation2 + $0x204] ss:$8 sps:$4 sm:$0xff]  }
  0x78   :  { %745 = vmatpush1.bf16.msra.mxu0 %v1941_v37  ;;  %776 = vmatprep.mubr.bf16.mxu0 %v1666_v39  ;;  %v2375_v37 = vld [vmem:[%s2426_s0 + $0x10] sm:$0xff]  ;;  %v1991_v39 = vld [vmem:[#allocation2 + $0x200] ss:$8 sps:$4 sm:$0xff]  }
  0x79   :  { %746 = vmatprep.subr.bf16.mxu0 %v1946_v38  ;;  %1100 = vmatpush1.bf16.msra.mxu1 %v2081_v31  ;;  %v1665_v38 = vcombine.low %v2365_v35, %v2365_v35  ;;  %v1668_v40 = vcombine.high %v2375_v37, %v2375_v37  ;;  %v2005_v35 = vld [vmem:[#allocation2 + $0x244] ss:$8 sps:$4 sm:$0xff]   ;;  %v1667_v8 = vcombine.low %v2375_v37, %v2375_v37  ;;  %v2093_v37 = vld [vmem:[#allocation6] ss:$16 sps:$4 sm:$0xff]  }
  0x7c   :  { %747 = vmatpush1.bf16.msra.mxu0 %v1944_v42  ;;  %v1994_v42 = vld [vmem:[#allocation2 + $0x210] ss:$8 sps:$4 sm:$0xff]  }
  0x7d   :  { %748 = vmatprep.subr.bf16.mxu0 %v1949_v44  ;;  %v1997_v44 = vld [vmem:[#allocation2 + $0x220] ss:$8 sps:$4 sm:$0xff]  }
  0x80   :  { %749 = vmatpush1.bf16.msra.mxu0 %v1947_v49  ;;  %v2006_v49 = vld [vmem:[#allocation2 + $0x250] ss:$8 sps:$4 sm:$0xff]  }
  0x81   :  { %750 = vmatprep.subr.bf16.mxu0 %v1952_v50  ;;  %v2011_v50 = vld [vmem:[#allocation2 + $0x264] ss:$8 sps:$4 sm:$0xff]  }
  0x84   :  { %751 = vmatpush1.bf16.msra.mxu0 %v1950_v53  ;;  %v2084_v53 = vld [vmem:[#allocation4 + $0xd0] ss:$8 sps:$4 sm:$0xff]  }
  0x85   :  { %752 = vmatprep.subr.bf16.mxu0 %v1955_v54  ;;  %v2086_v54 = vld [vmem:[#allocation4 + $0xd4] ss:$8 sps:$4 sm:$0xff]  }
  0x86   :  { %1101 = vmatprep.subr.bf16.mxu1 %v2086_v54  ;;  %v2122_v54 = vld [vmem:[#allocation6 + $0x124] ss:$16 sps:$4 sm:$0xff]  }
  0x87   :  { %1102 = vmatpush1.bf16.msra.mxu1 %v2084_v53  ;;  %v2117_v53 = vld [vmem:[#allocation6 + $0x100] ss:$16 sps:$4 sm:$0xff]  }
  0x88   :  { %753 = vmatpush1.bf16.msra.mxu0 %v1953_v57  ;;  %v2015_v57 = vld [vmem:[#allocation2 + $0x280] ss:$8 sps:$4 sm:$0xff]  }
  0x89   :  { %754 = vmatprep.subr.bf16.mxu0 %v1958_v58  ;;  %v2020_v58 = vld [vmem:[#allocation2 + $0x294] ss:$8 sps:$4 sm:$0xff]  }
  0x8c   :  { %755 = vmatpush1.bf16.msra.mxu0 %v1956_v61  ;;  %v2021_v61 = vld [vmem:[#allocation2 + $0x2a0] ss:$8 sps:$4 sm:$0xff]  }
  0x8d   :  { %756 = vmatprep.subr.bf16.mxu0 %v1961_v62  ;;  %v2026_v62 = vld [vmem:[#allocation2 + $0x2b4] ss:$8 sps:$4 sm:$0xff]  }
  0x90   :  { %757 = vmatpush1.bf16.msra.mxu0 %v1959_v1  ;;  %v2027_v1 = vld [vmem:[#allocation2 + $0x2c0] ss:$8 sps:$4 sm:$0xff]  }
  0x91   :  { %758 = vmatprep.subr.bf16.mxu0 %v1964_v2  ;;  %v2032_v2 = vld [vmem:[#allocation2 + $0x2d4] ss:$8 sps:$4 sm:$0xff]  }
  0x94   :  { %759 = vmatpush1.bf16.msra.mxu0 %v1962_v5  ;;  %v2033_v5 = vld [vmem:[#allocation2 + $0x2e0] ss:$8 sps:$4 sm:$0xff]  }
  0x95   :  { %760 = vmatprep.subr.bf16.mxu0 %v1967_v6  ;;  %v2040_v6 = vld [vmem:[#allocation2 + $0x2f4] ss:$8 sps:$4 sm:$0xff]  }
  0x98   :  { %761 = vmatpush1.bf16.msra.mxu0 %v1965_v9  ;;  %v2089_v9 = vld [vmem:[#allocation4 + $0xe4] ss:$8 sps:$4 sm:$0xff]  }
  0x99   :  { %762 = vmatprep.subr.bf16.mxu0 %v1970_v10  ;;  %v2087_v10 = vld [vmem:[#allocation4 + $0xe0] ss:$8 sps:$4 sm:$0xff]   ;;  %1103 = vmatprep.subr.bf16.mxu1 %v2089_v9 }
  0x9a   :  { %1104 = vmatpush1.bf16.msra.mxu1 %v2087_v10 }
  0x9b   :  { %1105 = vmatprep.subr.bf16.mxu1 %v2092_v12 }
  0x9c   :  { %763 = vmatpush1.bf16.msra.mxu0 %v1968_v13 }
  0x9d   :  { %764 = vmatprep.subr.bf16.mxu0 %v1973_v14  ;;  %v2090_v14 = vld [vmem:[#allocation4 + $0xf0] ss:$8 sps:$4 sm:$0xff]  }
  0x9e   :  { %1106 = vmatpush1.bf16.msra.mxu1 %v2090_v14 }
  0xa0   :  { %765 = vmatpush1.bf16.msra.mxu0 %v1971_v17  ;;  %v2095_v17 = vld [vmem:[#allocation6 + $0x4] ss:$16 sps:$4 sm:$0xff]  }
  0xa1   :  { %766 = vmatprep.subr.bf16.mxu0 %v1976_v18  ;;  %1526 = vmatprep.subr.bf16.mxu1 %v2095_v17  ;;  %v175_v18 = vlaneseq  ;;  %v2141_v17 = vld [vmem:[#allocation6 + $0x8] ss:$16 sps:$4 sm:$0xff]  }
  0xa3   :  { %v2383_v19 = vshrl.u32 %v175_v18, 7 }
  0xa4   :  { %767 = vmatpush1.bf16.msra.mxu0 %v1974_v21  ;;  %v173_v21 = vld [vmem:[%s2428_s2] sm:$0x3] }
  0xa5   :  { %768 = vmatprep.subr.bf16.mxu0 %v1979_v22  ;;  %v2386_v20 = vsub.s32 0, %v2383_v19  ;;  %v2392_v22 = vsub.s32 1, %v2383_v19 }
  0xa7   :  { %v178_v23 = vrot.slane %v173_v21, %v2386_v20  ;;  %v182_v24 = vrot.slane %v173_v21, %v2392_v22  ;;  %v2146_v21 = vld [vmem:[#allocation6 + $0x2c] ss:$16 sps:$4 sm:$0xff]  }
  0xa8   :  { %769 = vmatpush1.bf16.msra.mxu0 %v1977_v25 }
  0xa9   :  { %770 = vmatprep.subr.bf16.mxu0 %v1982_v26 }
  0xac   :  { %771 = vmatpush1.bf16.msra.mxu0 %v1980_v29 }
  0xad   :  { %772 = vmatprep.subr.bf16.mxu0 %v1985_v30 }
  0xb0   :  { %773 = vmatpush1.bf16.msra.mxu0 %v1983_v32 }
  0xb1   :  { %774 = vmatprep.subr.bf16.mxu0 %v1988_v33 }
  0xb4   :  { %775 = vmatpush1.bf16.msra.mxu0 %v1986_v34 }
  0xb5   :  { %785 = vmatprep.subr.bf16.mxu0 %v1993_v36 }
  0xb7   :  { %777 = vmatmul.mubr.bf16.vlgmr.msra.gmra.mrb[0].mxu0 %v1665_v38 }
  0xb8   :  { %786 = vmatpush1.bf16.msra.mxu0 %v1991_v39  ;;  %817 = vmatprep.mubr.bf16.mxu0 %v1668_v40  ;;  %v2098_v39 = vld [vmem:[#allocation6 + $0x24] ss:$16 sps:$4 sm:$0xff]   ;;  %v2096_v40 = vld [vmem:[#allocation6 + $0x20] ss:$16 sps:$4 sm:$0xff]  }
  0xb9   :  { %787 = vmatprep.subr.bf16.mxu0 %v1996_v41  ;;  %v2101_v41 = vld [vmem:[#allocation6 + $0x44] ss:$16 sps:$4 sm:$0xff]  }
  0xbc   :  { %788 = vmatpush1.bf16.msra.mxu0 %v1994_v42  ;;  %v2099_v42 = vld [vmem:[#allocation6 + $0x40] ss:$16 sps:$4 sm:$0xff]  }
  0xbd   :  { %789 = vmatprep.subr.bf16.mxu0 %v1999_v43  ;;  %v2104_v43 = vld [vmem:[#allocation6 + $0x64] ss:$16 sps:$4 sm:$0xff]  }
  0xc0   :  { %790 = vmatpush1.bf16.msra.mxu0 %v1997_v44  ;;  %v2102_v44 = vld [vmem:[#allocation6 + $0x60] ss:$16 sps:$4 sm:$0xff]  }
  0xc1   :  { %791 = vmatprep.subr.bf16.mxu0 %v2002_v45  ;;  %v2107_v45 = vld [vmem:[#allocation6 + $0x84] ss:$16 sps:$4 sm:$0xff]  }
  0xc4   :  { %792 = vmatpush1.bf16.msra.mxu0 %v2000_v46  ;;  %v2105_v46 = vld [vmem:[#allocation6 + $0x80] ss:$16 sps:$4 sm:$0xff]  }
  0xc5   :  { %793 = vmatprep.subr.bf16.mxu0 %v2005_v35  ;;  %v2110_v35 = vld [vmem:[#allocation6 + $0xa4] ss:$16 sps:$4 sm:$0xff]  }
  0xc8   :  { %794 = vmatpush1.bf16.msra.mxu0 %v2003_v47  ;;  %v2108_v47 = vld [vmem:[#allocation6 + $0xa0] ss:$16 sps:$4 sm:$0xff]  }
  0xc9   :  { %795 = vmatprep.subr.bf16.mxu0 %v2008_v48  ;;  %v2113_v48 = vld [vmem:[#allocation6 + $0xc4] ss:$16 sps:$4 sm:$0xff]  }
  0xcc   :  { %796 = vmatpush1.bf16.msra.mxu0 %v2006_v49  ;;  %v2111_v49 = vld [vmem:[#allocation6 + $0xc0] ss:$16 sps:$4 sm:$0xff]  }
  0xcd   :  { %797 = vmatprep.subr.bf16.mxu0 %v2011_v50  ;;  %v2116_v50 = vld [vmem:[#allocation6 + $0xe4] ss:$16 sps:$4 sm:$0xff]  }
  0xd0   :  { %798 = vmatpush1.bf16.msra.mxu0 %v2009_v51  ;;  %v2114_v51 = vld [vmem:[#allocation6 + $0xe0] ss:$16 sps:$4 sm:$0xff]  }
  0xd1   :  { %799 = vmatprep.subr.bf16.mxu0 %v2014_v52  ;;  %v2119_v52 = vld [vmem:[#allocation6 + $0x104] ss:$16 sps:$4 sm:$0xff]  }
  0xd4   :  { %800 = vmatpush1.bf16.msra.mxu0 %v2012_v55  ;;  %v2120_v55 = vld [vmem:[#allocation6 + $0x120] ss:$16 sps:$4 sm:$0xff]  }
  0xd5   :  { %801 = vmatprep.subr.bf16.mxu0 %v2017_v56  ;;  %v2125_v56 = vld [vmem:[#allocation6 + $0x144] ss:$16 sps:$4 sm:$0xff]  }
  0xd8   :  { %802 = vmatpush1.bf16.msra.mxu0 %v2015_v57  ;;  %v2123_v57 = vld [vmem:[#allocation6 + $0x140] ss:$16 sps:$4 sm:$0xff]  }
  0xd9   :  { %803 = vmatprep.subr.bf16.mxu0 %v2020_v58  ;;  %v2128_v58 = vld [vmem:[#allocation6 + $0x164] ss:$16 sps:$4 sm:$0xff]  }
  0xdc   :  { %804 = vmatpush1.bf16.msra.mxu0 %v2018_v59  ;;  %v2126_v59 = vld [vmem:[#allocation6 + $0x160] ss:$16 sps:$4 sm:$0xff]  }
  0xdd   :  { %805 = vmatprep.subr.bf16.mxu0 %v2023_v60  ;;  %v2131_v60 = vld [vmem:[#allocation6 + $0x184] ss:$16 sps:$4 sm:$0xff]  }
  0xe0   :  { %806 = vmatpush1.bf16.msra.mxu0 %v2021_v61  ;;  %v2129_v61 = vld [vmem:[#allocation6 + $0x180] ss:$16 sps:$4 sm:$0xff]  }
  0xe1   :  { %807 = vmatprep.subr.bf16.mxu0 %v2026_v62  ;;  %v2134_v62 = vld [vmem:[#allocation6 + $0x1a4] ss:$16 sps:$4 sm:$0xff]  }
  0xe4   :  { %808 = vmatpush1.bf16.msra.mxu0 %v2024_v63  ;;  %v2132_v63 = vld [vmem:[#allocation6 + $0x1a0] ss:$16 sps:$4 sm:$0xff]  }
  0xe5   :  { %809 = vmatprep.subr.bf16.mxu0 %v2029_v0  ;;  %v2137_v0 = vld [vmem:[#allocation6 + $0x1c4] ss:$16 sps:$4 sm:$0xff]  }
  0xe8   :  { %810 = vmatpush1.bf16.msra.mxu0 %v2027_v1  ;;  %v2135_v1 = vld [vmem:[#allocation6 + $0x1c0] ss:$16 sps:$4 sm:$0xff]  }
  0xe9   :  { %811 = vmatprep.subr.bf16.mxu0 %v2032_v2  ;;  %v2140_v2 = vld [vmem:[#allocation6 + $0x1e4] ss:$16 sps:$4 sm:$0xff]  }
  0xec   :  { %812 = vmatpush1.bf16.msra.mxu0 %v2030_v3  ;;  %v2138_v3 = vld [vmem:[#allocation6 + $0x1e0] ss:$16 sps:$4 sm:$0xff]  }
  0xed   :  { %813 = vmatprep.subr.bf16.mxu0 %v2035_v4  ;;  %v2143_v4 = vld [vmem:[#allocation6 + $0xc] ss:$16 sps:$4 sm:$0xff]  }
  0xf0   :  { %814 = vmatpush1.bf16.msra.mxu0 %v2033_v5  ;;  %v903_v5 = vld [vmem:[%s2430_s4] sm:$0x3] }
  0xf1   :  { %815 = vmatprep.subr.bf16.mxu0 %v2040_v6  ;;  %v908_v6 = vrot.slane %v903_v5, %v2386_v20 }
  0xf4   :  { %816 = vmatpush1.bf16.msra.mxu0 %v2038_v7  ;;  %v912_v7 = vrot.slane %v903_v5, %v2392_v22 }
  0xf7   :  { %818 = vmatmul.mubr.bf16.vlgmr.msra.gmra.mrb[0].mxu0 %v1667_v8 }
 0x11b   :  { %v860_v11 = vpop.f32.mrb[0].mxu1 }
 0x11c   :  { %v862_v13 = vpop.f32.mrb[1].mxu1 }
 0x11d   :  { %v864_v15 = vpop.f32.mrb[2].mxu1 }
 0x11e   :  { %v865_v16 = vpop.f32.mrb[3].mxu1 }
 0x1ca   :  { %v819_v25 = vpop.f32.mrb[0].mxu0 }
 0x1cb   :  { %v1871_v26 = vadd.f32 %v819_v25, %v178_v23  ;;  %v821_v27 = vpop.f32.mrb[1].mxu0  ;;  %v2144_v23 = vld [vmem:[#allocation6 + $0x28] ss:$16 sps:$4 sm:$0xff]  }
 0x1cc   :  { %v1873_v28 = vadd.f32 %v821_v27, %v182_v24  ;;  %v823_v29 = vpop.f32.mrb[2].mxu0  ;;  %v2149_v24 = vld [vmem:[#allocation6 + $0x4c] ss:$16 sps:$4 sm:$0xff]   ;;  %v2147_v25 = vld [vmem:[#allocation6 + $0x48] ss:$16 sps:$4 sm:$0xff]  }
 0x1cd   :  { %v1872_v30 = vadd.f32 %v1871_v26, %v860_v11  ;;  %v824_v31 = vpop.f32.mrb[3].mxu0  ;;  %v2152_v26 = vld [vmem:[#allocation6 + $0x6c] ss:$16 sps:$4 sm:$0xff]   ;;  %v2150_v27 = vld [vmem:[#allocation6 + $0x68] ss:$16 sps:$4 sm:$0xff]  }
 0x1ce   :  { %v1874_v32 = vadd.f32 %v1873_v28, %v862_v13  ;;  %v2155_v28 = vld [vmem:[#allocation6 + $0x8c] ss:$16 sps:$4 sm:$0xff]   ;;  %v2153_v29 = vld [vmem:[#allocation6 + $0x88] ss:$16 sps:$4 sm:$0xff]  }
 0x1cf   :  { %v867_v33 = vmax.f32 %v1872_v30, 0.0  ;;  %v2158_v30 = vld [vmem:[#allocation6 + $0xac] ss:$16 sps:$4 sm:$0xff]   ;;  %v2156_v31 = vld [vmem:[#allocation6 + $0xa8] ss:$16 sps:$4 sm:$0xff]  }
 0x1d0   :  { %v868_v34 = vmax.f32 %v1874_v32, 0.0  ;;  %v2161_v32 = vld [vmem:[#allocation6 + $0xcc] ss:$16 sps:$4 sm:$0xff]  }
 0x1d1   :  { %v869_v38 = vpack.c.bf16 %v867_v33, %v867_v33  ;;  %v2159_v33 = vld [vmem:[#allocation6 + $0xc8] ss:$16 sps:$4 sm:$0xff]  }
 0x1d2   :  { %v870_v36 = vpack.c.bf16 %v868_v34, %v868_v34  ;;  %v2164_v34 = vld [vmem:[#allocation6 + $0xec] ss:$16 sps:$4 sm:$0xff]  }
 0x1d4   :  { %1107 = vmatprep.mubr.bf16.mxu1 %v870_v36  ;;  %v2162_v36 = vld [vmem:[#allocation6 + $0xe8] ss:$16 sps:$4 sm:$0xff]  }
 0x1d5   :  { %1108 = vmatmul.mubr.bf16.vlgmr.msra.gmra.mrb[4].mxu1 %v869_v38  ;;  %v2165_v38 = vld [vmem:[#allocation6 + $0x108] ss:$16 sps:$4 sm:$0xff]  }
 0x1d6   :  { %1527 = vmatpush1.bf16.msra.mxu1 %v2093_v37  ;;  %v2167_v37 = vld [vmem:[#allocation6 + $0x10c] ss:$16 sps:$4 sm:$0xff]  }
 0x1d7   :  { %1528 = vmatprep.subr.bf16.mxu1 %v2098_v39  ;;  %v2170_v39 = vld [vmem:[#allocation6 + $0x12c] ss:$16 sps:$4 sm:$0xff]  }
 0x1da   :  { %1529 = vmatpush1.bf16.msra.mxu1 %v2096_v40  ;;  %v2168_v40 = vld [vmem:[#allocation6 + $0x128] ss:$16 sps:$4 sm:$0xff]  }
 0x1db   :  { %1530 = vmatprep.subr.bf16.mxu1 %v2101_v41  ;;  %v2173_v41 = vld [vmem:[#allocation6 + $0x14c] ss:$16 sps:$4 sm:$0xff]  }
 0x1de   :  { %1531 = vmatpush1.bf16.msra.mxu1 %v2099_v42  ;;  %v2171_v42 = vld [vmem:[#allocation6 + $0x148] ss:$16 sps:$4 sm:$0xff]  }
 0x1df   :  { %1532 = vmatprep.subr.bf16.mxu1 %v2104_v43  ;;  %v2176_v43 = vld [vmem:[#allocation6 + $0x16c] ss:$16 sps:$4 sm:$0xff]  }
 0x1e2   :  { %1533 = vmatpush1.bf16.msra.mxu1 %v2102_v44  ;;  %v2174_v44 = vld [vmem:[#allocation6 + $0x168] ss:$16 sps:$4 sm:$0xff]  }
 0x1e3   :  { %1534 = vmatprep.subr.bf16.mxu1 %v2107_v45  ;;  %v2179_v45 = vld [vmem:[#allocation6 + $0x18c] ss:$16 sps:$4 sm:$0xff]  }
 0x1e6   :  { %1535 = vmatpush1.bf16.msra.mxu1 %v2105_v46  ;;  %v2177_v46 = vld [vmem:[#allocation6 + $0x188] ss:$16 sps:$4 sm:$0xff]  }
 0x1e7   :  { %1536 = vmatprep.subr.bf16.mxu1 %v2110_v35  ;;  %v2182_v35 = vld [vmem:[#allocation6 + $0x1ac] ss:$16 sps:$4 sm:$0xff]  }
 0x1ea   :  { %1537 = vmatpush1.bf16.msra.mxu1 %v2108_v47  ;;  %v2180_v47 = vld [vmem:[#allocation6 + $0x1a8] ss:$16 sps:$4 sm:$0xff]  }
 0x1eb   :  { %1538 = vmatprep.subr.bf16.mxu1 %v2113_v48  ;;  %v2185_v48 = vld [vmem:[#allocation6 + $0x1cc] ss:$16 sps:$4 sm:$0xff]  }
 0x1ee   :  { %1539 = vmatpush1.bf16.msra.mxu1 %v2111_v49  ;;  %v2183_v49 = vld [vmem:[#allocation6 + $0x1c8] ss:$16 sps:$4 sm:$0xff]  }
 0x1ef   :  { %1540 = vmatprep.subr.bf16.mxu1 %v2116_v50  ;;  %v2188_v50 = vld [vmem:[#allocation6 + $0x1ec] ss:$16 sps:$4 sm:$0xff]  }
 0x1f2   :  { %1541 = vmatpush1.bf16.msra.mxu1 %v2114_v51  ;;  %v2186_v51 = vld [vmem:[#allocation6 + $0x1e8] ss:$16 sps:$4 sm:$0xff]  }
 0x1f3   :  { %1542 = vmatprep.subr.bf16.mxu1 %v2119_v52  ;;  %v1184_v52 = vld [vmem:[%s2432_s6] sm:$0xf] }
 0x1f6   :  { %1543 = vmatpush1.bf16.msra.mxu1 %v2117_v53  ;;  %v1189_v53 = vrot.slane %v1184_v52, %v2386_v20 }
 0x1f7   :  { %1544 = vmatprep.subr.bf16.mxu1 %v2122_v54  ;;  %v1193_v54 = vrot.slane %v1184_v52, %v2392_v22 }
 0x1fa   :  { %1545 = vmatpush1.bf16.msra.mxu1 %v2120_v55 }
 0x1fb   :  { %1546 = vmatprep.subr.bf16.mxu1 %v2125_v56 }
 0x1fe   :  { %1547 = vmatpush1.bf16.msra.mxu1 %v2123_v57 }
 0x1ff   :  { %1548 = vmatprep.subr.bf16.mxu1 %v2128_v58 }
 0x202   :  { %1549 = vmatpush1.bf16.msra.mxu1 %v2126_v59 }
 0x203   :  { %1550 = vmatprep.subr.bf16.mxu1 %v2131_v60 }
 0x206   :  { %1551 = vmatpush1.bf16.msra.mxu1 %v2129_v61 }
 0x207   :  { %1552 = vmatprep.subr.bf16.mxu1 %v2134_v62  ;;  %v1196_v62 = vsub.s32 2, %v2383_v19 }
 0x20a   :  { %1553 = vmatpush1.bf16.msra.mxu1 %v2132_v63  ;;  %v1200_v63 = vsub.s32 3, %v2383_v19 }
 0x20b   :  { %1554 = vmatprep.subr.bf16.mxu1 %v2137_v0  ;;  %v1197_v0 = vrot.slane %v1184_v52, %v1196_v62 }
 0x20e   :  { %1555 = vmatpush1.bf16.msra.mxu1 %v2135_v1  ;;  %v1201_v1 = vrot.slane %v1184_v52, %v1200_v63 }
 0x20f   :  { %1556 = vmatprep.subr.bf16.mxu1 %v2140_v2 }
 0x212   :  { %1557 = vmatpush1.bf16.msra.mxu1 %v2138_v3 }
 0x213   :  { %1567 = vmatprep.subr.bf16.mxu1 %v2143_v4 }
 0x2a8   :  { %v1109_v8 = vpop.f32.mrb[4].mxu1 }
 0x2a9   :  { %v1110_v9 = vadd.f32 %v1109_v8, %v908_v6  ;;  %v1111_v10 = vpop.f32.mrb[5].mxu1 }
 0x2aa   :  { %v1112_v11 = vadd.f32 %v1111_v10, %v912_v7  ;;  %v1113_v12 = vpop.f32.mrb[6].mxu1 }
 0x2ab   :  { %v1116_v13 = vmax.f32 %v1110_v9, 0.0  ;;  %v1114_v14 = vpop.f32.mrb[7].mxu1  ;;  %v1614_v12 = vld [vmem:[%s2433_s7] sm:$0x3] }
 0x2ac   :  { %v1117_v15 = vmax.f32 %v1112_v11, 0.0  ;;  %v1619_v19 = vrot.slane %v1614_v12, %v2386_v20 }
 0x2ad   :  { %v2401_v18 = vpack.c.bf16 %v1116_v13, %v1116_v13  ;;  %v1623_v13 = vrot.slane %v1614_v12, %v2392_v22 }
 0x2ae   :  { %v1119_v16 = vpack.c.bf16 %v1117_v15, %v1117_v15 }
 0x2b0   :  { %1558 = vmatprep.mubr.bf16.mxu1 %v1119_v16 }
 0x2b1   :  { %1559 = vmatmul.mubr.bf16.vlgmr.msra.gmra.mrb[8].mxu1 %v2401_v18 }
 0x2b2   :  { %1568 = vmatpush1.bf16.msra.mxu1 %v2141_v17  ;;  %1599 = vmatprep.mubr.bf16.mxu1 %v1119_v16 }
 0x2b3   :  { %1569 = vmatprep.subr.bf16.mxu1 %v2146_v21 }
 0x2b6   :  { %1570 = vmatpush1.bf16.msra.mxu1 %v2144_v23 }
 0x2b7   :  { %1571 = vmatprep.subr.bf16.mxu1 %v2149_v24 }
 0x2ba   :  { %1572 = vmatpush1.bf16.msra.mxu1 %v2147_v25 }
 0x2bb   :  { %1573 = vmatprep.subr.bf16.mxu1 %v2152_v26 }
 0x2be   :  { %1574 = vmatpush1.bf16.msra.mxu1 %v2150_v27 }
 0x2bf   :  { %1575 = vmatprep.subr.bf16.mxu1 %v2155_v28 }
 0x2c2   :  { %1576 = vmatpush1.bf16.msra.mxu1 %v2153_v29 }
 0x2c3   :  { %1577 = vmatprep.subr.bf16.mxu1 %v2158_v30 }
 0x2c6   :  { %1578 = vmatpush1.bf16.msra.mxu1 %v2156_v31 }
 0x2c7   :  { %1579 = vmatprep.subr.bf16.mxu1 %v2161_v32 }
 0x2ca   :  { %1580 = vmatpush1.bf16.msra.mxu1 %v2159_v33 }
 0x2cb   :  { %1581 = vmatprep.subr.bf16.mxu1 %v2164_v34 }
 0x2ce   :  { %1582 = vmatpush1.bf16.msra.mxu1 %v2162_v36 }
 0x2cf   :  { %1583 = vmatprep.subr.bf16.mxu1 %v2167_v37 }
 0x2d2   :  { %1584 = vmatpush1.bf16.msra.mxu1 %v2165_v38 }
 0x2d3   :  { %1585 = vmatprep.subr.bf16.mxu1 %v2170_v39 }
 0x2d6   :  { %1586 = vmatpush1.bf16.msra.mxu1 %v2168_v40 }
 0x2d7   :  { %1587 = vmatprep.subr.bf16.mxu1 %v2173_v41 }
 0x2da   :  { %1588 = vmatpush1.bf16.msra.mxu1 %v2171_v42 }
 0x2db   :  { %1589 = vmatprep.subr.bf16.mxu1 %v2176_v43 }
 0x2de   :  { %1590 = vmatpush1.bf16.msra.mxu1 %v2174_v44 }
 0x2df   :  { %1591 = vmatprep.subr.bf16.mxu1 %v2179_v45 }
 0x2e2   :  { %1592 = vmatpush1.bf16.msra.mxu1 %v2177_v46 }
 0x2e3   :  { %1593 = vmatprep.subr.bf16.mxu1 %v2182_v35 }
 0x2e6   :  { %1594 = vmatpush1.bf16.msra.mxu1 %v2180_v47 }
 0x2e7   :  { %1595 = vmatprep.subr.bf16.mxu1 %v2185_v48 }
 0x2ea   :  { %1596 = vmatpush1.bf16.msra.mxu1 %v2183_v49 }
 0x2eb   :  { %1597 = vmatprep.subr.bf16.mxu1 %v2188_v50 }
 0x2ee   :  { %1598 = vmatpush1.bf16.msra.mxu1 %v2186_v51 }
 0x2f1   :  { %1600 = vmatmul.mubr.bf16.vlgmr.msra.gmra.mrb[12].mxu1 %v2401_v18 }
 0x384   :  { %v1560_v55 = vpop.f32.mrb[8].mxu1 }
 0x385   :  { %v1561_v56 = vadd.f32 %v1560_v55, %v1189_v53  ;;  %v1562_v57 = vpop.f32.mrb[9].mxu1 }
 0x386   :  { %v1563_v58 = vadd.f32 %v1562_v57, %v1193_v54  ;;  %v1564_v59 = vpop.f32.mrb[10].mxu1 }
 0x387   :  { %v1565_v60 = vpop.f32.mrb[11].mxu1 }
 0x388   :  { %v1869_v61 = vpack.c.bf16 %v1563_v58, %v1561_v56 }
 0x38a   :  { %1647 = vst [vmem:[%s2434_s8 + $0x8] sm:$0xff] %v1869_v61 }
 0x3c4   :  { %v1601_v2 = vpop.f32.mrb[12].mxu1 }
 0x3c5   :  { %v1602_v3 = vadd.f32 %v1601_v2, %v1197_v0  ;;  %v1603_v4 = vpop.f32.mrb[13].mxu1 }
 0x3c6   :  { %v1604_v5 = vadd.f32 %v1603_v4, %v1201_v1  ;;  %v1605_v6 = vpop.f32.mrb[14].mxu1 }
 0x3c7   :  { %v1608_v7 = vmul.f32 0.5, %v1602_v3  ;;  %v1606_v8 = vpop.f32.mrb[15].mxu1 }
 0x3c8   :  { %v1609_v9 = vmul.f32 0.5, %v1604_v5 }
 0x3c9   :  { %v1610_v10 = vmul.f32 1.442695, %v1608_v7 }
 0x3ca   :  { %v1612_v11 = vmul.f32 1.442695, %v1609_v9 }
 0x3cb   :  { %2189 = vpow2.f32 %v1610_v10 }
 0x3cc   :  { %2191 = vpow2.f32 %v1612_v11 }
 0x3d5   :  { %v2190_v14 = vpop.eup %2189 }
 0x3d6   :  { %v2192_v15 = vpop.eup %2191  ;;  %v1626_v16 = vmul.f32 %v2190_v14, %v1619_v19 }
 0x3d7   :  { %v1627_v17 = vmul.f32 %v2192_v15, %v1623_v13  ;;  %v1870_v18 = vpack.c.bf16 %v2192_v15, %v2190_v14 }
 0x3d8   :  { %v1628_v21 = vadd.f32 %v1626_v16, %v1561_v56 }
 0x3d9   :  { %v1629_v23 = vadd.f32 %v1627_v17, %v1563_v58  ;;  %1656 = vst [vmem:[%s2434_s8 + $0x10] sm:$0xff] %v1870_v18 }
 0x3db   :  { %v1868_v24 = vpack.c.bf16 %v1629_v23, %v1628_v21 }
 0x3dd   :  { %1638 = vst [vmem:[%s2434_s8] sm:$0xff] %v1868_v24 }
 0x3de   :  { %1661 = vsyncpa [#allocation3], 1 }
 0x3df   :  { %1662 = vsyncpa [#allocation5], 1 }

// kernel: encoder_forward.1
= control target key start
LH: loop header
LB: loop body
LE: loop exit
PB: predicated region body
PF: predicated region fallthrough
CT: control target
= control target key end

     0   :  { %13 = vsyncpa [#allocation3], 0  ;;  %s2426_s0 = inlined_call_operand.vmem [shape: bf16[8,784], index: 0, kind: input, shape index: {}]   ;;  %s2427_s1 = inlined_call_operand.hbm [shape: bf16[784,256], index: 1, kind: input, shape index: {}]   ;;  %s2428_s2 = inlined_call_operand.vmem [shape: f32[1,256], index: 2, kind: input, shape index: {}]   ;;  %s2429_s3 = inlined_call_operand.hbm [shape: bf16[256,256], index: 3, kind: input, shape index: {}]   ;;  %s2430_s4 = inlined_call_operand.vmem [shape: f32[1,256], index: 4, kind: input, shape index: {}]   ;;  %s2431_s5 = inlined_call_operand.hbm [shape: bf16[256,512], index: 5, kind: input, shape index: {}]   ;;  %s2432_s6 = inlined_call_operand.vmem [shape: f32[1,512], index: 6, kind: input, shape index: {}]   ;;  %s2433_s7 = inlined_call_operand.vmem [shape: f32[1,256], index: 7, kind: input, shape index: {}]   ;;  %s2434_s8 = inlined_call_operand.vmem [shape: bf16[8,768], index: 8, kind: output, shape index: {}]  }
   0x1   :  { %14 = vsyncpa [#allocation5], 0  ;;  %s2263_s27 = smov [#allocation4]   ;;  %s2264_s29 = smov [#allocation2]  }
   0x2   :  { %s36_s28 = sshll.u32 %s2263_s27, 4  ;;  %s22_s30 = sshll.u32 %s2264_s29, 4  ;;  %s37_s28 = int_to_ptr.vmem [resolvable:$true] %s36_s28  ;;  %s2316_s30 = int_to_ptr.vmem [resolvable:$true] %s22_s30 }
   0x3   :  { %s2193_s11 = scalar_lea.hbm %s2429_s3, 4096 }
   0x4   :  { %p2194_p0 = scmp.ne.s32.totalorder %s2429_s3, %s2193_s11  ;;  %p2197_p1 = scmp.lt.u32.totalorder %s2193_s11, %s2429_s3 }
   0x6   :  { %p2199_p2 = pnand %p2197_p1, %p2194_p0 }
   0x8   :  { %2202 = shalt.err (!%p2199_p2)
}
   0x9   :  { %s2203_s16 = scalar_lea.vmem %s37_s28, 4096  ;;  %p2208_p4 = scmp.lt.s32.totalorder %s37_s28, %s37_s28 }
   0xa   :  { %p2204_p3 = scmp.ne.s32.totalorder %s37_s28, %s2203_s16  ;;  %p2209_p5 = scmp.lt.s32.totalorder %s2203_s16, %s2203_s16 }
   0xc   :  { %p2210_p6 = por %p2209_p5, %p2208_p4 }
   0xe   :  { %p2211_p7 = pnand %p2210_p6, %p2204_p3 }
  0x10   :  { %2214 = shalt.err (!%p2211_p7)
}
  0x11   :  { %s2265_s17 = smov 128   ;;  %s2266_s18 = smov 8  }
  0x12   :  { %42 = dma.hbm_to_vmem [thread:$0]  %s2429_s3, 4096, %s37_s28, [#allocation5], %s2265_s17, %s2265_s17, %s2266_s18  }
  0x13   :  { %s2215_s23 = scalar_lea.hbm %s2427_s1, 12544 }
  0x14   :  { %p2216_p8 = scmp.ne.s32.totalorder %s2427_s1, %s2215_s23  ;;  %p2219_p9 = scmp.lt.u32.totalorder %s2215_s23, %s2427_s1 }
  0x16   :  { %p2221_p10 = pnand %p2219_p9, %p2216_p8 }
  0x18   :  { %2224 = shalt.err (!%p2221_p10)
}
  0x19   :  { %s2225_s29 = scalar_lea.vmem %s2316_s30, 12544  ;;  %p2230_p12 = scmp.lt.s32.totalorder %s2316_s30, %s2316_s30 }
  0x1a   :  { %p2226_p11 = scmp.ne.s32.totalorder %s2316_s30, %s2225_s29  ;;  %p2231_p13 = scmp.lt.s32.totalorder %s2225_s29, %s2225_s29 }
  0x1c   :  { %p2232_p0 = por %p2231_p13, %p2230_p12 }
  0x1e   :  { %p2233_p1 = pnand %p2232_p0, %p2226_p11 }
  0x20   :  { %2236 = shalt.err (!%p2233_p1)
}
  0x21   :  { %28 = dma.hbm_to_vmem [thread:$0]  %s2427_s1, 12544, %s2316_s30, [#allocation3], %s2265_s17, %s2265_s17, %s2266_s18  }
  0x22   :  { %s2267_s9 = smov [#allocation6]   ;;  %s2237_s13 = scalar_lea.hbm %s2431_s5, 8192 }
  0x23   :  { %s50_s10 = sshll.u32 %s2267_s9, 4  ;;  %p2238_p2 = scmp.ne.s32.totalorder %s2431_s5, %s2237_s13  ;;  %s51_s10 = int_to_ptr.vmem [resolvable:$true] %s50_s10 }
  0x24   :  { %p2241_p3 = scmp.lt.u32.totalorder %s2237_s13, %s2431_s5 }
  0x26   :  { %p2243_p4 = pnand %p2241_p3, %p2238_p2 }
  0x28   :  { %2246 = shalt.err (!%p2243_p4)
}
  0x29   :  { %s2247_s20 = scalar_lea.vmem %s51_s10, 8192  ;;  %p2252_p6 = scmp.lt.s32.totalorder %s51_s10, %s51_s10 }
  0x2a   :  { %p2248_p5 = scmp.ne.s32.totalorder %s51_s10, %s2247_s20  ;;  %p2253_p7 = scmp.lt.s32.totalorder %s2247_s20, %s2247_s20 }
  0x2c   :  { %p2254_p8 = por %p2253_p7, %p2252_p6 }
  0x2e   :  { %p2255_p9 = pnand %p2254_p8, %p2248_p5 }
  0x30   :  { %2258 = shalt.err (!%p2255_p9)
}
  0x31   :  { %s2268_s1 = smov 256   ;;  %s2269_s30 = smov 16  }
  0x32   :  { %56 = dma.hbm_to_vmem [thread:$0]  %s2431_s5, 8192, %s51_s10, [#allocation5], %s2268_s1, %s2268_s1, %s2269_s30  }
  0x33   :  { %2259 = dma.done.wait [#allocation3], 12544  }
  0x34   :  { %2260 = vsyncadd [#allocation3], 4294954752 }
  0x35   :  { %2261 = dma.done.wait [#allocation5], 12288  }
  0x36   :  { %2262 = vsyncadd [#allocation5], 4294955008  ;;  %v1891_v0 = vld [vmem:[#allocation2 + $0x4] ss:$8 sps:$4 sm:$0xff]   ;;  %v1893_v1 = vld [vmem:[#allocation2] ss:$8 sps:$4 sm:$0xff]  }
  0x37   :  { %703 = vmatprep.subr.bf16.mxu0 %v1891_v0  ;;  %v1894_v2 = vld [vmem:[#allocation2 + $0x14] ss:$8 sps:$4 sm:$0xff]   ;;  %v1896_v3 = vld [vmem:[#allocation2 + $0x10] ss:$8 sps:$4 sm:$0xff]   ;;  %v1897_v4 = vld [vmem:[#allocation2 + $0x24] ss:$8 sps:$4 sm:$0xff]  }
  0x38   :  { %704 = vmatpush1.bf16.msra.mxu0 %v1893_v1  ;;  %v1899_v5 = vld [vmem:[#allocation2 + $0x20] ss:$8 sps:$4 sm:$0xff]   ;;  %v1900_v6 = vld [vmem:[#allocation2 + $0x34] ss:$8 sps:$4 sm:$0xff]   ;;  %v1902_v7 = vld [vmem:[#allocation2 + $0x30] ss:$8 sps:$4 sm:$0xff]  }
  0x39   :  { %705 = vmatprep.subr.bf16.mxu0 %v1894_v2  ;;  %v1903_v8 = vld [vmem:[#allocation2 + $0x44] ss:$8 sps:$4 sm:$0xff]   ;;  %v1905_v9 = vld [vmem:[#allocation2 + $0x40] ss:$8 sps:$4 sm:$0xff]   ;;  %v1906_v10 = vld [vmem:[#allocation2 + $0x54] ss:$8 sps:$4 sm:$0xff]  }
  0x3a   :  { %v1908_v11 = vld [vmem:[#allocation2 + $0x50] ss:$8 sps:$4 sm:$0xff]   ;;  %v1909_v12 = vld [vmem:[#allocation2 + $0x64] ss:$8 sps:$4 sm:$0xff]   ;;  %v1911_v15 = vld [vmem:[#allocation2 + $0x60] ss:$8 sps:$4 sm:$0xff]  }
  0x3b   :  { %v71_v13 = vld [vmem:[%s2426_s0] sm:$0xff]  ;;  %v1912_v16 = vld [vmem:[#allocation2 + $0x74] ss:$8 sps:$4 sm:$0xff]   ;;  %v1914_v17 = vld [vmem:[#allocation2 + $0x70] ss:$8 sps:$4 sm:$0xff]   ;;  %v2270_v41 = vmov 0  }
  0x3c   :  { %706 = vmatpush1.bf16.msra.mxu0 %v1896_v3  ;;  %v1664_v14 = vcombine.high %v71_v13, %v71_v13  ;;  %v1915_v18 = vld [vmem:[#allocation2 + $0x84] ss:$8 sps:$4 sm:$0xff]   ;;  %v1917_v19 = vld [vmem:[#allocation2 + $0x80] ss:$8 sps:$4 sm:$0xff]   ;;  %v1918_v20 = vld [vmem:[#allocation2 + $0x94] ss:$8 sps:$4 sm:$0xff]   ;;  %v1663_v36 = vcombine.low %v71_v13, %v71_v13  ;;  %858 = vmatprep.mubr.bf16.mxu1 %v2270_v41 }
  0x3d   :  { %707 = vmatprep.subr.bf16.mxu0 %v1897_v4  ;;  %v1920_v21 = vld [vmem:[#allocation2 + $0x90] ss:$8 sps:$4 sm:$0xff]   ;;  %v1921_v22 = vld [vmem:[#allocation2 + $0xa4] ss:$8 sps:$4 sm:$0xff]   ;;  %v1923_v23 = vld [vmem:[#allocation2 + $0xa0] ss:$8 sps:$4 sm:$0xff]  }
  0x3e   :  { %735 = vmatprep.mubr.bf16.mxu0 %v1664_v14  ;;  %v1924_v24 = vld [vmem:[#allocation2 + $0xb4] ss:$8 sps:$4 sm:$0xff]   ;;  %v1926_v25 = vld [vmem:[#allocation2 + $0xb0] ss:$8 sps:$4 sm:$0xff]   ;;  %v1927_v26 = vld [vmem:[#allocation2 + $0xc4] ss:$8 sps:$4 sm:$0xff]  }
  0x3f   :  { %v1929_v27 = vld [vmem:[#allocation2 + $0xc0] ss:$8 sps:$4 sm:$0xff]   ;;  %v1930_v28 = vld [vmem:[#allocation2 + $0xd4] ss:$8 sps:$4 sm:$0xff]   ;;  %v1932_v29 = vld [vmem:[#allocation2 + $0xd0] ss:$8 sps:$4 sm:$0xff]  }
  0x40   :  { %708 = vmatpush1.bf16.msra.mxu0 %v1899_v5  ;;  %v1933_v30 = vld [vmem:[#allocation2 + $0xe4] ss:$8 sps:$4 sm:$0xff]   ;;  %v1935_v31 = vld [vmem:[#allocation2 + $0xe0] ss:$8 sps:$4 sm:$0xff]   ;;  %v1936_v32 = vld [vmem:[#allocation2 + $0xf4] ss:$8 sps:$4 sm:$0xff]  }
  0x41   :  { %709 = vmatprep.subr.bf16.mxu0 %v1900_v6  ;;  %v1938_v33 = vld [vmem:[#allocation2 + $0xf0] ss:$8 sps:$4 sm:$0xff]   ;;  %v1943_v34 = vld [vmem:[#allocation2 + $0x104] ss:$8 sps:$4 sm:$0xff]   ;;  %v1941_v37 = vld [vmem:[#allocation2 + $0x100] ss:$8 sps:$4 sm:$0xff]  }
  0x42   :  { %v2365_v35 = vld [vmem:[%s2426_s0 + $0x8] sm:$0xff]  ;;  %v1946_v38 = vld [vmem:[#allocation2 + $0x114] ss:$8 sps:$4 sm:$0xff]   ;;  %v1944_v42 = vld [vmem:[#allocation2 + $0x110] ss:$8 sps:$4 sm:$0xff]   ;;  %vm699_vm0 = vcmask 130048  }
  0x43   :  { %v1666_v39 = vcombine.high %v2365_v35, %v2365_v35  ;;  %v2036_v40 = vld [vmem:[#allocation2 + $0x304] ss:$8 sps:$4 sm:$0xff]   ;;  %v2041_v43 = vld [vmem:[#allocation2 + $0x300] ss:$8 sps:$4 sm:$0xff]   ;;  %v2044_v45 = vld [vmem:[%s2426_s0 + $0x18] ss:$0 sps:$4 sm:$0xff]  }
  0x44   :  { %710 = vmatpush1.bf16.msra.mxu0 %v1902_v7  ;;  %v1949_v44 = vld [vmem:[#allocation2 + $0x124] ss:$8 sps:$4 sm:$0xff]   ;;  %826 = vmatprep.subr.bf16.mxu1 %v2036_v40  ;;  %v2045_v46 = vld [vmem:[#allocation4] ss:$8 sps:$4 sm:$0xff]   ;;  %v2047_v47 = vld [vmem:[#allocation4 + $0x4] ss:$8 sps:$4 sm:$0xff]  }
  0x45   :  { %711 = vmatprep.subr.bf16.mxu0 %v1903_v8  ;;  %827 = vmatpush1.bf16.msra.mxu1 %v2041_v43  ;;  %v2050_v48 = vld [vmem:[#allocation4 + $0x14] ss:$8 sps:$4 sm:$0xff]   ;;  %v1947_v49 = vld [vmem:[#allocation2 + $0x120] ss:$8 sps:$4 sm:$0xff]   ;;  %v1952_v50 = vld [vmem:[#allocation2 + $0x134] ss:$8 sps:$4 sm:$0xff]  }
  0x46   :  { %1075 = vmatprep.subr.bf16.mxu1 %v2047_v47  ;;  %v2048_v51 = vld [vmem:[#allocation4 + $0x10] ss:$8 sps:$4 sm:$0xff]   ;;  %v2053_v52 = vld [vmem:[#allocation4 + $0x24] ss:$8 sps:$4 sm:$0xff]   ;;  %v1950_v53 = vld [vmem:[#allocation2 + $0x130] ss:$8 sps:$4 sm:$0xff]  }
  0x47   :  { %v1955_v54 = vld [vmem:[#allocation2 + $0x144] ss:$8 sps:$4 sm:$0xff]   ;;  %v2051_v55 = vld [vmem:[#allocation4 + $0x20] ss:$8 sps:$4 sm:$0xff]   ;;  %v1953_v57 = vld [vmem:[#allocation2 + $0x140] ss:$8 sps:$4 sm:$0xff]  }
  0x48   :  { %712 = vmatpush1.bf16.msra.mxu0 %v1905_v9  ;;  %1768 = vmatmul.mubr.msk.bf16.vlgmr.msra.gmra.mrb[0].mxu1 %vm699_vm0, %v2044_v45  ;;  %v2056_v56 = vld [vmem:[#allocation4 + $0x34] ss:$8 sps:$4 sm:$0xff]   ;;  %v1958_v58 = vld [vmem:[#allocation2 + $0x154] ss:$8 sps:$4 sm:$0xff]   ;;  %v2054_v59 = vld [vmem:[#allocation4 + $0x30] ss:$8 sps:$4 sm:$0xff]  }
  0x49   :  { %713 = vmatprep.subr.bf16.mxu0 %v1906_v10  ;;  %1076 = vmatpush1.bf16.msra.mxu1 %v2045_v46  ;;  %v2059_v60 = vld [vmem:[#allocation4 + $0x44] ss:$8 sps:$4 sm:$0xff]   ;;  %v1956_v61 = vld [vmem:[#allocation2 + $0x150] ss:$8 sps:$4 sm:$0xff]   ;;  %v1961_v62 = vld [vmem:[#allocation2 + $0x164] ss:$8 sps:$4 sm:$0xff]  }
  0x4a   :  { %1077 = vmatprep.subr.bf16.mxu1 %v2050_v48  ;;  %v2057_v63 = vld [vmem:[#allocation4 + $0x40] ss:$8 sps:$4 sm:$0xff]   ;;  %v2062_v0 = vld [vmem:[#allocation4 + $0x54] ss:$8 sps:$4 sm:$0xff]   ;;  %v1959_v1 = vld [vmem:[#allocation2 + $0x160] ss:$8 sps:$4 sm:$0xff]  }
  0x4b   :  { %v1964_v2 = vld [vmem:[#allocation2 + $0x174] ss:$8 sps:$4 sm:$0xff]   ;;  %v2060_v3 = vld [vmem:[#allocation4 + $0x50] ss:$8 sps:$4 sm:$0xff]   ;;  %v1962_v5 = vld [vmem:[#allocation2 + $0x170] ss:$8 sps:$4 sm:$0xff]  }
  0x4c   :  { %714 = vmatpush1.bf16.msra.mxu0 %v1908_v11  ;;  %v2065_v4 = vld [vmem:[#allocation4 + $0x64] ss:$8 sps:$4 sm:$0xff]   ;;  %v1967_v6 = vld [vmem:[#allocation2 + $0x184] ss:$8 sps:$4 sm:$0xff]   ;;  %v2063_v7 = vld [vmem:[#allocation4 + $0x60] ss:$8 sps:$4 sm:$0xff]  }
  0x4d   :  { %715 = vmatprep.subr.bf16.mxu0 %v1909_v12  ;;  %1078 = vmatpush1.bf16.msra.mxu1 %v2048_v51  ;;  %v2068_v8 = vld [vmem:[#allocation4 + $0x74] ss:$8 sps:$4 sm:$0xff]   ;;  %v1965_v9 = vld [vmem:[#allocation2 + $0x180] ss:$8 sps:$4 sm:$0xff]   ;;  %v1970_v10 = vld [vmem:[#allocation2 + $0x194] ss:$8 sps:$4 sm:$0xff]  }
  0x4e   :  { %1079 = vmatprep.subr.bf16.mxu1 %v2053_v52  ;;  %v2066_v11 = vld [vmem:[#allocation4 + $0x70] ss:$8 sps:$4 sm:$0xff]   ;;  %v2071_v12 = vld [vmem:[#allocation4 + $0x84] ss:$8 sps:$4 sm:$0xff]   ;;  %v1968_v13 = vld [vmem:[#allocation2 + $0x190] ss:$8 sps:$4 sm:$0xff]  }
  0x4f   :  { %v1973_v14 = vld [vmem:[#allocation2 + $0x1a4] ss:$8 sps:$4 sm:$0xff]   ;;  %v1996_v41 = vld [vmem:[#allocation2 + $0x214] ss:$8 sps:$4 sm:$0xff]   ;;  %v2000_v46 = vld [vmem:[#allocation2 + $0x230] ss:$8 sps:$4 sm:$0xff]  }
  0x50   :  { %716 = vmatpush1.bf16.msra.mxu0 %v1911_v15  ;;  %v2069_v15 = vld [vmem:[#allocation4 + $0x80] ss:$8 sps:$4 sm:$0xff]   ;;  %v1999_v43 = vld [vmem:[#allocation2 + $0x224] ss:$8 sps:$4 sm:$0xff]   ;;  %v2002_v45 = vld [vmem:[#allocation2 + $0x234] ss:$8 sps:$4 sm:$0xff]  }
  0x51   :  { %717 = vmatprep.subr.bf16.mxu0 %v1912_v16  ;;  %1080 = vmatpush1.bf16.msra.mxu1 %v2051_v55  ;;  %v2074_v16 = vld [vmem:[#allocation4 + $0x94] ss:$8 sps:$4 sm:$0xff]   ;;  %v2003_v47 = vld [vmem:[#allocation2 + $0x240] ss:$8 sps:$4 sm:$0xff]   ;;  %v2008_v48 = vld [vmem:[#allocation2 + $0x254] ss:$8 sps:$4 sm:$0xff]  }
  0x52   :  { %1081 = vmatprep.subr.bf16.mxu1 %v2056_v56  ;;  %v2009_v51 = vld [vmem:[#allocation2 + $0x260] ss:$8 sps:$4 sm:$0xff]   ;;  %v2014_v52 = vld [vmem:[#allocation2 + $0x274] ss:$8 sps:$4 sm:$0xff]   ;;  %v2012_v55 = vld [vmem:[#allocation2 + $0x270] ss:$8 sps:$4 sm:$0xff]  }
  0x53   :  { %v2017_v56 = vld [vmem:[#allocation2 + $0x284] ss:$8 sps:$4 sm:$0xff]  }
  0x54   :  { %718 = vmatpush1.bf16.msra.mxu0 %v1914_v17  ;;  %v1971_v17 = vld [vmem:[#allocation2 + $0x1a0] ss:$8 sps:$4 sm:$0xff]  }
  0x55   :  { %719 = vmatprep.subr.bf16.mxu0 %v1915_v18  ;;  %1082 = vmatpush1.bf16.msra.mxu1 %v2054_v59  ;;  %v1976_v18 = vld [vmem:[#allocation2 + $0x1b4] ss:$8 sps:$4 sm:$0xff]   ;;  %v2018_v59 = vld [vmem:[#allocation2 + $0x290] ss:$8 sps:$4 sm:$0xff]  }
  0x56   :  { %1083 = vmatprep.subr.bf16.mxu1 %v2059_v60  ;;  %v2023_v60 = vld [vmem:[#allocation2 + $0x2a4] ss:$8 sps:$4 sm:$0xff]  }
  0x58   :  { %720 = vmatpush1.bf16.msra.mxu0 %v1917_v19  ;;  %v2072_v19 = vld [vmem:[#allocation4 + $0x90] ss:$8 sps:$4 sm:$0xff]  }
  0x59   :  { %721 = vmatprep.subr.bf16.mxu0 %v1918_v20  ;;  %1084 = vmatpush1.bf16.msra.mxu1 %v2057_v63  ;;  %v2077_v20 = vld [vmem:[#allocation4 + $0xa4] ss:$8 sps:$4 sm:$0xff]   ;;  %v2024_v63 = vld [vmem:[#allocation2 + $0x2b0] ss:$8 sps:$4 sm:$0xff]  }
  0x5a   :  { %1085 = vmatprep.subr.bf16.mxu1 %v2062_v0  ;;  %v2029_v0 = vld [vmem:[#allocation2 + $0x2c4] ss:$8 sps:$4 sm:$0xff]  }
  0x5c   :  { %722 = vmatpush1.bf16.msra.mxu0 %v1920_v21  ;;  %v1974_v21 = vld [vmem:[#allocation2 + $0x1b0] ss:$8 sps:$4 sm:$0xff]  }
  0x5d   :  { %723 = vmatprep.subr.bf16.mxu0 %v1921_v22  ;;  %1086 = vmatpush1.bf16.msra.mxu1 %v2060_v3  ;;  %v1979_v22 = vld [vmem:[#allocation2 + $0x1c4] ss:$8 sps:$4 sm:$0xff]   ;;  %v2030_v3 = vld [vmem:[#allocation2 + $0x2d0] ss:$8 sps:$4 sm:$0xff]  }
  0x5e   :  { %1087 = vmatprep.subr.bf16.mxu1 %v2065_v4  ;;  %v2035_v4 = vld [vmem:[#allocation2 + $0x2e4] ss:$8 sps:$4 sm:$0xff]  }
  0x60   :  { %724 = vmatpush1.bf16.msra.mxu0 %v1923_v23  ;;  %v2075_v23 = vld [vmem:[#allocation4 + $0xa0] ss:$8 sps:$4 sm:$0xff]  }
  0x61   :  { %725 = vmatprep.subr.bf16.mxu0 %v1924_v24  ;;  %1088 = vmatpush1.bf16.msra.mxu1 %v2063_v7  ;;  %v2080_v24 = vld [vmem:[#allocation4 + $0xb4] ss:$8 sps:$4 sm:$0xff]   ;;  %v2038_v7 = vld [vmem:[#allocation2 + $0x2f0] ss:$8 sps:$4 sm:$0xff]  }
  0x62   :  { %1089 = vmatprep.subr.bf16.mxu1 %v2068_v8 }
  0x64   :  { %726 = vmatpush1.bf16.msra.mxu0 %v1926_v25  ;;  %v1977_v25 = vld [vmem:[#allocation2 + $0x1c0] ss:$8 sps:$4 sm:$0xff]  }
  0x65   :  { %727 = vmatprep.subr.bf16.mxu0 %v1927_v26  ;;  %1090 = vmatpush1.bf16.msra.mxu1 %v2066_v11  ;;  %v1982_v26 = vld [vmem:[#allocation2 + $0x1d4] ss:$8 sps:$4 sm:$0xff]  }
  0x66   :  { %1091 = vmatprep.subr.bf16.mxu1 %v2071_v12  ;;  %v2092_v12 = vld [vmem:[#allocation4 + $0xf4] ss:$8 sps:$4 sm:$0xff]  }
  0x68   :  { %728 = vmatpush1.bf16.msra.mxu0 %v1929_v27  ;;  %v2078_v27 = vld [vmem:[#allocation4 + $0xb0] ss:$8 sps:$4 sm:$0xff]  }
  0x69   :  { %729 = vmatprep.subr.bf16.mxu0 %v1930_v28  ;;  %1092 = vmatpush1.bf16.msra.mxu1 %v2069_v15  ;;  %v2083_v28 = vld [vmem:[#allocation4 + $0xc4] ss:$8 sps:$4 sm:$0xff]  }
  0x6a   :  { %1093 = vmatprep.subr.bf16.mxu1 %v2074_v16 }
  0x6c   :  { %730 = vmatpush1.bf16.msra.mxu0 %v1932_v29  ;;  %v1980_v29 = vld [vmem:[#allocation2 + $0x1d0] ss:$8 sps:$4 sm:$0xff]  }
  0x6d   :  { %731 = vmatprep.subr.bf16.mxu0 %v1933_v30  ;;  %1094 = vmatpush1.bf16.msra.mxu1 %v2072_v19  ;;  %v1985_v30 = vld [vmem:[#allocation2 + $0x1e4] ss:$8 sps:$4 sm:$0xff]  }
  0x6e   :  { %1095 = vmatprep.subr.bf16.mxu1 %v2077_v20 }
  0x70   :  { %732 = vmatpush1.bf16.msra.mxu0 %v1935_v31  ;;  %v2081_v31 = vld [vmem:[#allocation4 + $0xc0] ss:$8 sps:$4 sm:$0xff]  }
  0x71   :  { %733 = vmatprep.subr.bf16.mxu0 %v1936_v32  ;;  %1096 = vmatpush1.bf16.msra.mxu1 %v2075_v23  ;;  %v1983_v32 = vld [vmem:[#allocation2 + $0x1e0] ss:$8 sps:$4 sm:$0xff]  }
  0x72   :  { %1097 = vmatprep.subr.bf16.mxu1 %v2080_v24 }
  0x74   :  { %734 = vmatpush1.bf16.msra.mxu0 %v1938_v33  ;;  %v1988_v33 = vld [vmem:[#allocation2 + $0x1f4] ss:$8 sps:$4 sm:$0xff]  }
  0x75   :  { %744 = vmatprep.subr.bf16.mxu0 %v1943_v34  ;;  %1098 = vmatpush1.bf16.msra.mxu1 %v2078_v27  ;;  %v1986_v34 = vld [vmem:[#allocation2 + $0x1f0] ss:$8 sps:$4 sm:$0xff]  }
  0x76   :  { %1099 = vmatprep.subr.bf16.mxu1 %v2083_v28 }
  0x77   :  { %736 = vmatmul.mubr.bf16.vlgmr.msra.gmra.mrb[0].mxu0 %v1663_v36  ;;  %v1993_v36 = vld [vmem:[#allocation2 + $0x204] ss:$8 sps:$4 sm:$0xff]  }
  0x78   :  { %745 = vmatpush1.bf16.msra.mxu0 %v1941_v37  ;;  %776 = vmatprep.mubr.bf16.mxu0 %v1666_v39  ;;  %v2375_v37 = vld [vmem:[%s2426_s0 + $0x10] sm:$0xff]  ;;  %v1991_v39 = vld [vmem:[#allocation2 + $0x200] ss:$8 sps:$4 sm:$0xff]  }
  0x79   :  { %746 = vmatprep.subr.bf16.mxu0 %v1946_v38  ;;  %1100 = vmatpush1.bf16.msra.mxu1 %v2081_v31  ;;  %v1665_v38 = vcombine.low %v2365_v35, %v2365_v35  ;;  %v1668_v40 = vcombine.high %v2375_v37, %v2375_v37  ;;  %v2005_v35 = vld [vmem:[#allocation2 + $0x244] ss:$8 sps:$4 sm:$0xff]   ;;  %v1667_v8 = vcombine.low %v2375_v37, %v2375_v37  ;;  %v2093_v37 = vld [vmem:[#allocation6] ss:$16 sps:$4 sm:$0xff]  }
  0x7c   :  { %747 = vmatpush1.bf16.msra.mxu0 %v1944_v42  ;;  %v1994_v42 = vld [vmem:[#allocation2 + $0x210] ss:$8 sps:$4 sm:$0xff]  }
  0x7d   :  { %748 = vmatprep.subr.bf16.mxu0 %v1949_v44  ;;  %v1997_v44 = vld [vmem:[#allocation2 + $0x220] ss:$8 sps:$4 sm:$0xff]  }
  0x80   :  { %749 = vmatpush1.bf16.msra.mxu0 %v1947_v49  ;;  %v2006_v49 = vld [vmem:[#allocation2 + $0x250] ss:$8 sps:$4 sm:$0xff]  }
  0x81   :  { %750 = vmatprep.subr.bf16.mxu0 %v1952_v50  ;;  %v2011_v50 = vld [vmem:[#allocation2 + $0x264] ss:$8 sps:$4 sm:$0xff]  }
  0x84   :  { %751 = vmatpush1.bf16.msra.mxu0 %v1950_v53  ;;  %v2084_v53 = vld [vmem:[#allocation4 + $0xd0] ss:$8 sps:$4 sm:$0xff]  }
  0x85   :  { %752 = vmatprep.subr.bf16.mxu0 %v1955_v54  ;;  %v2086_v54 = vld [vmem:[#allocation4 + $0xd4] ss:$8 sps:$4 sm:$0xff]  }
  0x86   :  { %1101 = vmatprep.subr.bf16.mxu1 %v2086_v54  ;;  %v2122_v54 = vld [vmem:[#allocation6 + $0x124] ss:$16 sps:$4 sm:$0xff]  }
  0x87   :  { %1102 = vmatpush1.bf16.msra.mxu1 %v2084_v53  ;;  %v2117_v53 = vld [vmem:[#allocation6 + $0x100] ss:$16 sps:$4 sm:$0xff]  }
  0x88   :  { %753 = vmatpush1.bf16.msra.mxu0 %v1953_v57  ;;  %v2015_v57 = vld [vmem:[#allocation2 + $0x280] ss:$8 sps:$4 sm:$0xff]  }
  0x89   :  { %754 = vmatprep.subr.bf16.mxu0 %v1958_v58  ;;  %v2020_v58 = vld [vmem:[#allocation2 + $0x294] ss:$8 sps:$4 sm:$0xff]  }
  0x8c   :  { %755 = vmatpush1.bf16.msra.mxu0 %v1956_v61  ;;  %v2021_v61 = vld [vmem:[#allocation2 + $0x2a0] ss:$8 sps:$4 sm:$0xff]  }
  0x8d   :  { %756 = vmatprep.subr.bf16.mxu0 %v1961_v62  ;;  %v2026_v62 = vld [vmem:[#allocation2 + $0x2b4] ss:$8 sps:$4 sm:$0xff]  }
  0x90   :  { %757 = vmatpush1.bf16.msra.mxu0 %v1959_v1  ;;  %v2027_v1 = vld [vmem:[#allocation2 + $0x2c0] ss:$8 sps:$4 sm:$0xff]  }
  0x91   :  { %758 = vmatprep.subr.bf16.mxu0 %v1964_v2  ;;  %v2032_v2 = vld [vmem:[#allocation2 + $0x2d4] ss:$8 sps:$4 sm:$0xff]  }
  0x94   :  { %759 = vmatpush1.bf16.msra.mxu0 %v1962_v5  ;;  %v2033_v5 = vld [vmem:[#allocation2 + $0x2e0] ss:$8 sps:$4 sm:$0xff]  }
  0x95   :  { %760 = vmatprep.subr.bf16.mxu0 %v1967_v6  ;;  %v2040_v6 = vld [vmem:[#allocation2 + $0x2f4] ss:$8 sps:$4 sm:$0xff]  }
  0x98   :  { %761 = vmatpush1.bf16.msra.mxu0 %v1965_v9  ;;  %v2089_v9 = vld [vmem:[#allocation4 + $0xe4] ss:$8 sps:$4 sm:$0xff]  }
  0x99   :  { %762 = vmatprep.subr.bf16.mxu0 %v1970_v10  ;;  %v2087_v10 = vld [vmem:[#allocation4 + $0xe0] ss:$8 sps:$4 sm:$0xff]   ;;  %1103 = vmatprep.subr.bf16.mxu1 %v2089_v9 }
  0x9a   :  { %1104 = vmatpush1.bf16.msra.mxu1 %v2087_v10 }
  0x9b   :  { %1105 = vmatprep.subr.bf16.mxu1 %v2092_v12 }
  0x9c   :  { %763 = vmatpush1.bf16.msra.mxu0 %v1968_v13 }
  0x9d   :  { %764 = vmatprep.subr.bf16.mxu0 %v1973_v14  ;;  %v2090_v14 = vld [vmem:[#allocation4 + $0xf0] ss:$8 sps:$4 sm:$0xff]  }
  0x9e   :  { %1106 = vmatpush1.bf16.msra.mxu1 %v2090_v14 }
  0xa0   :  { %765 = vmatpush1.bf16.msra.mxu0 %v1971_v17  ;;  %v2095_v17 = vld [vmem:[#allocation6 + $0x4] ss:$16 sps:$4 sm:$0xff]  }
  0xa1   :  { %766 = vmatprep.subr.bf16.mxu0 %v1976_v18  ;;  %1526 = vmatprep.subr.bf16.mxu1 %v2095_v17  ;;  %v175_v18 = vlaneseq  ;;  %v2141_v17 = vld [vmem:[#allocation6 + $0x8] ss:$16 sps:$4 sm:$0xff]  }
  0xa3   :  { %v2383_v19 = vshrl.u32 %v175_v18, 7 }
  0xa4   :  { %767 = vmatpush1.bf16.msra.mxu0 %v1974_v21  ;;  %v173_v21 = vld [vmem:[%s2428_s2] sm:$0x3] }
  0xa5   :  { %768 = vmatprep.subr.bf16.mxu0 %v1979_v22  ;;  %v2386_v20 = vsub.s32 0, %v2383_v19  ;;  %v2392_v22 = vsub.s32 1, %v2383_v19 }
  0xa7   :  { %v178_v23 = vrot.slane %v173_v21, %v2386_v20  ;;  %v182_v24 = vrot.slane %v173_v21, %v2392_v22  ;;  %v2146_v21 = vld [vmem:[#allocation6 + $0x2c] ss:$16 sps:$4 sm:$0xff]  }
  0xa8   :  { %769 = vmatpush1.bf16.msra.mxu0 %v1977_v25 }
  0xa9   :  { %770 = vmatprep.subr.bf16.mxu0 %v1982_v26 }
  0xac   :  { %771 = vmatpush1.bf16.msra.mxu0 %v1980_v29 }
  0xad   :  { %772 = vmatprep.subr.bf16.mxu0 %v1985_v30 }
  0xb0   :  { %773 = vmatpush1.bf16.msra.mxu0 %v1983_v32 }
  0xb1   :  { %774 = vmatprep.subr.bf16.mxu0 %v1988_v33 }
  0xb4   :  { %775 = vmatpush1.bf16.msra.mxu0 %v1986_v34 }
  0xb5   :  { %785 = vmatprep.subr.bf16.mxu0 %v1993_v36 }
  0xb7   :  { %777 = vmatmul.mubr.bf16.vlgmr.msra.gmra.mrb[0].mxu0 %v1665_v38 }
  0xb8   :  { %786 = vmatpush1.bf16.msra.mxu0 %v1991_v39  ;;  %817 = vmatprep.mubr.bf16.mxu0 %v1668_v40  ;;  %v2098_v39 = vld [vmem:[#allocation6 + $0x24] ss:$16 sps:$4 sm:$0xff]   ;;  %v2096_v40 = vld [vmem:[#allocation6 + $0x20] ss:$16 sps:$4 sm:$0xff]  }
  0xb9   :  { %787 = vmatprep.subr.bf16.mxu0 %v1996_v41  ;;  %v2101_v41 = vld [vmem:[#allocation6 + $0x44] ss:$16 sps:$4 sm:$0xff]  }
  0xbc   :  { %788 = vmatpush1.bf16.msra.mxu0 %v1994_v42  ;;  %v2099_v42 = vld [vmem:[#allocation6 + $0x40] ss:$16 sps:$4 sm:$0xff]  }
  0xbd   :  { %789 = vmatprep.subr.bf16.mxu0 %v1999_v43  ;;  %v2104_v43 = vld [vmem:[#allocation6 + $0x64] ss:$16 sps:$4 sm:$0xff]  }
  0xc0   :  { %790 = vmatpush1.bf16.msra.mxu0 %v1997_v44  ;;  %v2102_v44 = vld [vmem:[#allocation6 + $0x60] ss:$16 sps:$4 sm:$0xff]  }
  0xc1   :  { %791 = vmatprep.subr.bf16.mxu0 %v2002_v45  ;;  %v2107_v45 = vld [vmem:[#allocation6 + $0x84] ss:$16 sps:$4 sm:$0xff]  }
  0xc4   :  { %792 = vmatpush1.bf16.msra.mxu0 %v2000_v46  ;;  %v2105_v46 = vld [vmem:[#allocation6 + $0x80] ss:$16 sps:$4 sm:$0xff]  }
  0xc5   :  { %793 = vmatprep.subr.bf16.mxu0 %v2005_v35  ;;  %v2110_v35 = vld [vmem:[#allocation6 + $0xa4] ss:$16 sps:$4 sm:$0xff]  }
  0xc8   :  { %794 = vmatpush1.bf16.msra.mxu0 %v2003_v47  ;;  %v2108_v47 = vld [vmem:[#allocation6 + $0xa0] ss:$16 sps:$4 sm:$0xff]  }
  0xc9   :  { %795 = vmatprep.subr.bf16.mxu0 %v2008_v48  ;;  %v2113_v48 = vld [vmem:[#allocation6 + $0xc4] ss:$16 sps:$4 sm:$0xff]  }
  0xcc   :  { %796 = vmatpush1.bf16.msra.mxu0 %v2006_v49  ;;  %v2111_v49 = vld [vmem:[#allocation6 + $0xc0] ss:$16 sps:$4 sm:$0xff]  }
  0xcd   :  { %797 = vmatprep.subr.bf16.mxu0 %v2011_v50  ;;  %v2116_v50 = vld [vmem:[#allocation6 + $0xe4] ss:$16 sps:$4 sm:$0xff]  }
  0xd0   :  { %798 = vmatpush1.bf16.msra.mxu0 %v2009_v51  ;;  %v2114_v51 = vld [vmem:[#allocation6 + $0xe0] ss:$16 sps:$4 sm:$0xff]  }
  0xd1   :  { %799 = vmatprep.subr.bf16.mxu0 %v2014_v52  ;;  %v2119_v52 = vld [vmem:[#allocation6 + $0x104] ss:$16 sps:$4 sm:$0xff]  }
  0xd4   :  { %800 = vmatpush1.bf16.msra.mxu0 %v2012_v55  ;;  %v2120_v55 = vld [vmem:[#allocation6 + $0x120] ss:$16 sps:$4 sm:$0xff]  }
  0xd5   :  { %801 = vmatprep.subr.bf16.mxu0 %v2017_v56  ;;  %v2125_v56 = vld [vmem:[#allocation6 + $0x144] ss:$16 sps:$4 sm:$0xff]  }
  0xd8   :  { %802 = vmatpush1.bf16.msra.mxu0 %v2015_v57  ;;  %v2123_v57 = vld [vmem:[#allocation6 + $0x140] ss:$16 sps:$4 sm:$0xff]  }
  0xd9   :  { %803 = vmatprep.subr.bf16.mxu0 %v2020_v58  ;;  %v2128_v58 = vld [vmem:[#allocation6 + $0x164] ss:$16 sps:$4 sm:$0xff]  }
  0xdc   :  { %804 = vmatpush1.bf16.msra.mxu0 %v2018_v59  ;;  %v2126_v59 = vld [vmem:[#allocation6 + $0x160] ss:$16 sps:$4 sm:$0xff]  }
  0xdd   :  { %805 = vmatprep.subr.bf16.mxu0 %v2023_v60  ;;  %v2131_v60 = vld [vmem:[#allocation6 + $0x184] ss:$16 sps:$4 sm:$0xff]  }
  0xe0   :  { %806 = vmatpush1.bf16.msra.mxu0 %v2021_v61  ;;  %v2129_v61 = vld [vmem:[#allocation6 + $0x180] ss:$16 sps:$4 sm:$0xff]  }
  0xe1   :  { %807 = vmatprep.subr.bf16.mxu0 %v2026_v62  ;;  %v2134_v62 = vld [vmem:[#allocation6 + $0x1a4] ss:$16 sps:$4 sm:$0xff]  }
  0xe4   :  { %808 = vmatpush1.bf16.msra.mxu0 %v2024_v63  ;;  %v2132_v63 = vld [vmem:[#allocation6 + $0x1a0] ss:$16 sps:$4 sm:$0xff]  }
  0xe5   :  { %809 = vmatprep.subr.bf16.mxu0 %v2029_v0  ;;  %v2137_v0 = vld [vmem:[#allocation6 + $0x1c4] ss:$16 sps:$4 sm:$0xff]  }
  0xe8   :  { %810 = vmatpush1.bf16.msra.mxu0 %v2027_v1  ;;  %v2135_v1 = vld [vmem:[#allocation6 + $0x1c0] ss:$16 sps:$4 sm:$0xff]  }
  0xe9   :  { %811 = vmatprep.subr.bf16.mxu0 %v2032_v2  ;;  %v2140_v2 = vld [vmem:[#allocation6 + $0x1e4] ss:$16 sps:$4 sm:$0xff]  }
  0xec   :  { %812 = vmatpush1.bf16.msra.mxu0 %v2030_v3  ;;  %v2138_v3 = vld [vmem:[#allocation6 + $0x1e0] ss:$16 sps:$4 sm:$0xff]  }
  0xed   :  { %813 = vmatprep.subr.bf16.mxu0 %v2035_v4  ;;  %v2143_v4 = vld [vmem:[#allocation6 + $0xc] ss:$16 sps:$4 sm:$0xff]  }
  0xf0   :  { %814 = vmatpush1.bf16.msra.mxu0 %v2033_v5  ;;  %v903_v5 = vld [vmem:[%s2430_s4] sm:$0x3] }
  0xf1   :  { %815 = vmatprep.subr.bf16.mxu0 %v2040_v6  ;;  %v908_v6 = vrot.slane %v903_v5, %v2386_v20 }
  0xf4   :  { %816 = vmatpush1.bf16.msra.mxu0 %v2038_v7  ;;  %v912_v7 = vrot.slane %v903_v5, %v2392_v22 }
  0xf7   :  { %818 = vmatmul.mubr.bf16.vlgmr.msra.gmra.mrb[0].mxu0 %v1667_v8 }
 0x11b   :  { %v860_v11 = vpop.f32.mrb[0].mxu1 }
 0x11c   :  { %v862_v13 = vpop.f32.mrb[1].mxu1 }
 0x11d   :  { %v864_v15 = vpop.f32.mrb[2].mxu1 }
 0x11e   :  { %v865_v16 = vpop.f32.mrb[3].mxu1 }
 0x1ca   :  { %v819_v25 = vpop.f32.mrb[0].mxu0 }
 0x1cb   :  { %v1871_v26 = vadd.f32 %v819_v25, %v178_v23  ;;  %v821_v27 = vpop.f32.mrb[1].mxu0  ;;  %v2144_v23 = vld [vmem:[#allocation6 + $0x28] ss:$16 sps:$4 sm:$0xff]  }
 0x1cc   :  { %v1873_v28 = vadd.f32 %v821_v27, %v182_v24  ;;  %v823_v29 = vpop.f32.mrb[2].mxu0  ;;  %v2149_v24 = vld [vmem:[#allocation6 + $0x4c] ss:$16 sps:$4 sm:$0xff]   ;;  %v2147_v25 = vld [vmem:[#allocation6 + $0x48] ss:$16 sps:$4 sm:$0xff]  }
 0x1cd   :  { %v1872_v30 = vadd.f32 %v1871_v26, %v860_v11  ;;  %v824_v31 = vpop.f32.mrb[3].mxu0  ;;  %v2152_v26 = vld [vmem:[#allocation6 + $0x6c] ss:$16 sps:$4 sm:$0xff]   ;;  %v2150_v27 = vld [vmem:[#allocation6 + $0x68] ss:$16 sps:$4 sm:$0xff]  }
 0x1ce   :  { %v1874_v32 = vadd.f32 %v1873_v28, %v862_v13  ;;  %v2155_v28 = vld [vmem:[#allocation6 + $0x8c] ss:$16 sps:$4 sm:$0xff]   ;;  %v2153_v29 = vld [vmem:[#allocation6 + $0x88] ss:$16 sps:$4 sm:$0xff]  }
 0x1cf   :  { %v867_v33 = vmax.f32 %v1872_v30, 0.0  ;;  %v2158_v30 = vld [vmem:[#allocation6 + $0xac] ss:$16 sps:$4 sm:$0xff]   ;;  %v2156_v31 = vld [vmem:[#allocation6 + $0xa8] ss:$16 sps:$4 sm:$0xff]  }
 0x1d0   :  { %v868_v34 = vmax.f32 %v1874_v32, 0.0  ;;  %v2161_v32 = vld [vmem:[#allocation6 + $0xcc] ss:$16 sps:$4 sm:$0xff]  }
 0x1d1   :  { %v869_v38 = vpack.c.bf16 %v867_v33, %v867_v33  ;;  %v2159_v33 = vld [vmem:[#allocation6 + $0xc8] ss:$16 sps:$4 sm:$0xff]  }
 0x1d2   :  { %v870_v36 = vpack.c.bf16 %v868_v34, %v868_v34  ;;  %v2164_v34 = vld [vmem:[#allocation6 + $0xec] ss:$16 sps:$4 sm:$0xff]  }
 0x1d4   :  { %1107 = vmatprep.mubr.bf16.mxu1 %v870_v36  ;;  %v2162_v36 = vld [vmem:[#allocation6 + $0xe8] ss:$16 sps:$4 sm:$0xff]  }
 0x1d5   :  { %1108 = vmatmul.mubr.bf16.vlgmr.msra.gmra.mrb[4].mxu1 %v869_v38  ;;  %v2165_v38 = vld [vmem:[#allocation6 + $0x108] ss:$16 sps:$4 sm:$0xff]  }
 0x1d6   :  { %1527 = vmatpush1.bf16.msra.mxu1 %v2093_v37  ;;  %v2167_v37 = vld [vmem:[#allocation6 + $0x10c] ss:$16 sps:$4 sm:$0xff]  }
 0x1d7   :  { %1528 = vmatprep.subr.bf16.mxu1 %v2098_v39  ;;  %v2170_v39 = vld [vmem:[#allocation6 + $0x12c] ss:$16 sps:$4 sm:$0xff]  }
 0x1da   :  { %1529 = vmatpush1.bf16.msra.mxu1 %v2096_v40  ;;  %v2168_v40 = vld [vmem:[#allocation6 + $0x128] ss:$16 sps:$4 sm:$0xff]  }
 0x1db   :  { %1530 = vmatprep.subr.bf16.mxu1 %v2101_v41  ;;  %v2173_v41 = vld [vmem:[#allocation6 + $0x14c] ss:$16 sps:$4 sm:$0xff]  }
 0x1de   :  { %1531 = vmatpush1.bf16.msra.mxu1 %v2099_v42  ;;  %v2171_v42 = vld [vmem:[#allocation6 + $0x148] ss:$16 sps:$4 sm:$0xff]  }
 0x1df   :  { %1532 = vmatprep.subr.bf16.mxu1 %v2104_v43  ;;  %v2176_v43 = vld [vmem:[#allocation6 + $0x16c] ss:$16 sps:$4 sm:$0xff]  }
 0x1e2   :  { %1533 = vmatpush1.bf16.msra.mxu1 %v2102_v44  ;;  %v2174_v44 = vld [vmem:[#allocation6 + $0x168] ss:$16 sps:$4 sm:$0xff]  }
 0x1e3   :  { %1534 = vmatprep.subr.bf16.mxu1 %v2107_v45  ;;  %v2179_v45 = vld [vmem:[#allocation6 + $0x18c] ss:$16 sps:$4 sm:$0xff]  }
 0x1e6   :  { %1535 = vmatpush1.bf16.msra.mxu1 %v2105_v46  ;;  %v2177_v46 = vld [vmem:[#allocation6 + $0x188] ss:$16 sps:$4 sm:$0xff]  }
 0x1e7   :  { %1536 = vmatprep.subr.bf16.mxu1 %v2110_v35  ;;  %v2182_v35 = vld [vmem:[#allocation6 + $0x1ac] ss:$16 sps:$4 sm:$0xff]  }
 0x1ea   :  { %1537 = vmatpush1.bf16.msra.mxu1 %v2108_v47  ;;  %v2180_v47 = vld [vmem:[#allocation6 + $0x1a8] ss:$16 sps:$4 sm:$0xff]  }
 0x1eb   :  { %1538 = vmatprep.subr.bf16.mxu1 %v2113_v48  ;;  %v2185_v48 = vld [vmem:[#allocation6 + $0x1cc] ss:$16 sps:$4 sm:$0xff]  }
 0x1ee   :  { %1539 = vmatpush1.bf16.msra.mxu1 %v2111_v49  ;;  %v2183_v49 = vld [vmem:[#allocation6 + $0x1c8] ss:$16 sps:$4 sm:$0xff]  }
 0x1ef   :  { %1540 = vmatprep.subr.bf16.mxu1 %v2116_v50  ;;  %v2188_v50 = vld [vmem:[#allocation6 + $0x1ec] ss:$16 sps:$4 sm:$0xff]  }
 0x1f2   :  { %1541 = vmatpush1.bf16.msra.mxu1 %v2114_v51  ;;  %v2186_v51 = vld [vmem:[#allocation6 + $0x1e8] ss:$16 sps:$4 sm:$0xff]  }
 0x1f3   :  { %1542 = vmatprep.subr.bf16.mxu1 %v2119_v52  ;;  %v1184_v52 = vld [vmem:[%s2432_s6] sm:$0xf] }
 0x1f6   :  { %1543 = vmatpush1.bf16.msra.mxu1 %v2117_v53  ;;  %v1189_v53 = vrot.slane %v1184_v52, %v2386_v20 }
 0x1f7   :  { %1544 = vmatprep.subr.bf16.mxu1 %v2122_v54  ;;  %v1193_v54 = vrot.slane %v1184_v52, %v2392_v22 }
 0x1fa   :  { %1545 = vmatpush1.bf16.msra.mxu1 %v2120_v55 }
 0x1fb   :  { %1546 = vmatprep.subr.bf16.mxu1 %v2125_v56 }
 0x1fe   :  { %1547 = vmatpush1.bf16.msra.mxu1 %v2123_v57 }
 0x1ff   :  { %1548 = vmatprep.subr.bf16.mxu1 %v2128_v58 }
 0x202   :  { %1549 = vmatpush1.bf16.msra.mxu1 %v2126_v59 }
 0x203   :  { %1550 = vmatprep.subr.bf16.mxu1 %v2131_v60 }
 0x206   :  { %1551 = vmatpush1.bf16.msra.mxu1 %v2129_v61 }
 0x207   :  { %1552 = vmatprep.subr.bf16.mxu1 %v2134_v62  ;;  %v1196_v62 = vsub.s32 2, %v2383_v19 }
 0x20a   :  { %1553 = vmatpush1.bf16.msra.mxu1 %v2132_v63  ;;  %v1200_v63 = vsub.s32 3, %v2383_v19 }
 0x20b   :  { %1554 = vmatprep.subr.bf16.mxu1 %v2137_v0  ;;  %v1197_v0 = vrot.slane %v1184_v52, %v1196_v62 }
 0x20e   :  { %1555 = vmatpush1.bf16.msra.mxu1 %v2135_v1  ;;  %v1201_v1 = vrot.slane %v1184_v52, %v1200_v63 }
 0x20f   :  { %1556 = vmatprep.subr.bf16.mxu1 %v2140_v2 }
 0x212   :  { %1557 = vmatpush1.bf16.msra.mxu1 %v2138_v3 }
 0x213   :  { %1567 = vmatprep.subr.bf16.mxu1 %v2143_v4 }
 0x2a8   :  { %v1109_v8 = vpop.f32.mrb[4].mxu1 }
 0x2a9   :  { %v1110_v9 = vadd.f32 %v1109_v8, %v908_v6  ;;  %v1111_v10 = vpop.f32.mrb[5].mxu1 }
 0x2aa   :  { %v1112_v11 = vadd.f32 %v1111_v10, %v912_v7  ;;  %v1113_v12 = vpop.f32.mrb[6].mxu1 }
 0x2ab   :  { %v1116_v13 = vmax.f32 %v1110_v9, 0.0  ;;  %v1114_v14 = vpop.f32.mrb[7].mxu1  ;;  %v1614_v12 = vld [vmem:[%s2433_s7] sm:$0x3] }
 0x2ac   :  { %v1117_v15 = vmax.f32 %v1112_v11, 0.0  ;;  %v1619_v19 = vrot.slane %v1614_v12, %v2386_v20 }
 0x2ad   :  { %v2401_v18 = vpack.c.bf16 %v1116_v13, %v1116_v13  ;;  %v1623_v13 = vrot.slane %v1614_v12, %v2392_v22 }
 0x2ae   :  { %v1119_v16 = vpack.c.bf16 %v1117_v15, %v1117_v15 }
 0x2b0   :  { %1558 = vmatprep.mubr.bf16.mxu1 %v1119_v16 }
 0x2b1   :  { %1559 = vmatmul.mubr.bf16.vlgmr.msra.gmra.mrb[8].mxu1 %v2401_v18 }
 0x2b2   :  { %1568 = vmatpush1.bf16.msra.mxu1 %v2141_v17  ;;  %1599 = vmatprep.mubr.bf16.mxu1 %v1119_v16 }
 0x2b3   :  { %1569 = vmatprep.subr.bf16.mxu1 %v2146_v21 }
 0x2b6   :  { %1570 = vmatpush1.bf16.msra.mxu1 %v2144_v23 }
 0x2b7   :  { %1571 = vmatprep.subr.bf16.mxu1 %v2149_v24 }
 0x2ba   :  { %1572 = vmatpush1.bf16.msra.mxu1 %v2147_v25 }
 0x2bb   :  { %1573 = vmatprep.subr.bf16.mxu1 %v2152_v26 }
 0x2be   :  { %1574 = vmatpush1.bf16.msra.mxu1 %v2150_v27 }
 0x2bf   :  { %1575 = vmatprep.subr.bf16.mxu1 %v2155_v28 }
 0x2c2   :  { %1576 = vmatpush1.bf16.msra.mxu1 %v2153_v29 }
 0x2c3   :  { %1577 = vmatprep.subr.bf16.mxu1 %v2158_v30 }
 0x2c6   :  { %1578 = vmatpush1.bf16.msra.mxu1 %v2156_v31 }
 0x2c7   :  { %1579 = vmatprep.subr.bf16.mxu1 %v2161_v32 }
 0x2ca   :  { %1580 = vmatpush1.bf16.msra.mxu1 %v2159_v33 }
 0x2cb   :  { %1581 = vmatprep.subr.bf16.mxu1 %v2164_v34 }
 0x2ce   :  { %1582 = vmatpush1.bf16.msra.mxu1 %v2162_v36 }
 0x2cf   :  { %1583 = vmatprep.subr.bf16.mxu1 %v2167_v37 }
 0x2d2   :  { %1584 = vmatpush1.bf16.msra.mxu1 %v2165_v38 }
 0x2d3   :  { %1585 = vmatprep.subr.bf16.mxu1 %v2170_v39 }
 0x2d6   :  { %1586 = vmatpush1.bf16.msra.mxu1 %v2168_v40 }
 0x2d7   :  { %1587 = vmatprep.subr.bf16.mxu1 %v2173_v41 }
 0x2da   :  { %1588 = vmatpush1.bf16.msra.mxu1 %v2171_v42 }
 0x2db   :  { %1589 = vmatprep.subr.bf16.mxu1 %v2176_v43 }
 0x2de   :  { %1590 = vmatpush1.bf16.msra.mxu1 %v2174_v44 }
 0x2df   :  { %1591 = vmatprep.subr.bf16.mxu1 %v2179_v45 }
 0x2e2   :  { %1592 = vmatpush1.bf16.msra.mxu1 %v2177_v46 }
 0x2e3   :  { %1593 = vmatprep.subr.bf16.mxu1 %v2182_v35 }
 0x2e6   :  { %1594 = vmatpush1.bf16.msra.mxu1 %v2180_v47 }
 0x2e7   :  { %1595 = vmatprep.subr.bf16.mxu1 %v2185_v48 }
 0x2ea   :  { %1596 = vmatpush1.bf16.msra.mxu1 %v2183_v49 }
 0x2eb   :  { %1597 = vmatprep.subr.bf16.mxu1 %v2188_v50 }
 0x2ee   :  { %1598 = vmatpush1.bf16.msra.mxu1 %v2186_v51 }
 0x2f1   :  { %1600 = vmatmul.mubr.bf16.vlgmr.msra.gmra.mrb[12].mxu1 %v2401_v18 }
 0x384   :  { %v1560_v55 = vpop.f32.mrb[8].mxu1 }
 0x385   :  { %v1561_v56 = vadd.f32 %v1560_v55, %v1189_v53  ;;  %v1562_v57 = vpop.f32.mrb[9].mxu1 }
 0x386   :  { %v1563_v58 = vadd.f32 %v1562_v57, %v1193_v54  ;;  %v1564_v59 = vpop.f32.mrb[10].mxu1 }
 0x387   :  { %v1565_v60 = vpop.f32.mrb[11].mxu1 }
 0x388   :  { %v1869_v61 = vpack.c.bf16 %v1563_v58, %v1561_v56 }
 0x38a   :  { %1647 = vst [vmem:[%s2434_s8 + $0x8] sm:$0xff] %v1869_v61 }
 0x3c4   :  { %v1601_v2 = vpop.f32.mrb[12].mxu1 }
 0x3c5   :  { %v1602_v3 = vadd.f32 %v1601_v2, %v1197_v0  ;;  %v1603_v4 = vpop.f32.mrb[13].mxu1 }
 0x3c6   :  { %v1604_v5 = vadd.f32 %v1603_v4, %v1201_v1  ;;  %v1605_v6 = vpop.f32.mrb[14].mxu1 }
 0x3c7   :  { %v1608_v7 = vmul.f32 0.5, %v1602_v3  ;;  %v1606_v8 = vpop.f32.mrb[15].mxu1 }
 0x3c8   :  { %v1609_v9 = vmul.f32 0.5, %v1604_v5 }
 0x3c9   :  { %v1610_v10 = vmul.f32 1.442695, %v1608_v7 }
 0x3ca   :  { %v1612_v11 = vmul.f32 1.442695, %v1609_v9 }
 0x3cb   :  { %2189 = vpow2.f32 %v1610_v10 }
 0x3cc   :  { %2191 = vpow2.f32 %v1612_v11 }
 0x3d5   :  { %v2190_v14 = vpop.eup %2189 }
 0x3d6   :  { %v2192_v15 = vpop.eup %2191  ;;  %v1626_v16 = vmul.f32 %v2190_v14, %v1619_v19 }
 0x3d7   :  { %v1627_v17 = vmul.f32 %v2192_v15, %v1623_v13  ;;  %v1870_v18 = vpack.c.bf16 %v2192_v15, %v2190_v14 }
 0x3d8   :  { %v1628_v21 = vadd.f32 %v1626_v16, %v1561_v56 }
 0x3d9   :  { %v1629_v23 = vadd.f32 %v1627_v17, %v1563_v58  ;;  %1656 = vst [vmem:[%s2434_s8 + $0x10] sm:$0xff] %v1870_v18 }
 0x3db   :  { %v1868_v24 = vpack.c.bf16 %v1629_v23, %v1628_v21 }
 0x3dd   :  { %1638 = vst [vmem:[%s2434_s8] sm:$0xff] %v1868_v24 }
 0x3de   :  { %1661 = vsyncpa [#allocation3], 1 }
 0x3df   :  { %1662 = vsyncpa [#allocation5], 1 }

</bundles_post_ra>
